<compile_context>
chip_gen: v6e
topology: v6e:2x2x1
jax: 0.10.0
libtpu: 0.0.40
codegen_flags: <defaults>
</compile_context>

<pallas_src>
import functools

import numpy as np
import jax
import jax.numpy as jnp
from jax.experimental import pallas as pl
from jax.experimental.pallas import tpu as pltpu

INPUT_DIM = 1024   # DTFD default input_dim
INNER_DIM = 512    # DTFD default inner_dim
ATT_D = 128        # Attention default D
GROUP = 5          # DTFD default group
GROUP_PAD = 8      # group rows padded to one sublane tile


def dtfd_fused_kernel(x_ref, g_ref, w1_ref, wvu_ref, bvu_ref, ww_ref, out_ref,
                      *, n_valid):
    # DimReduction: Linear(no bias) + ReLU (dropout inactive in eval).
    # Native bf16 MXU matmul, f32 accumulate; elementwise math stays f32.
    x = x_ref[0]                                                       # (Np, 1024) bf16
    mid = jnp.maximum(
        jnp.dot(x, w1_ref[...], preferred_element_type=jnp.float32), 0.0)   # (Np, 512) f32

    # Gated attention: fused V|U projection (bf16 MXU) -> tanh / sigmoid halves (f32 EUP).
    vu = jnp.dot(mid.astype(jnp.bfloat16), wvu_ref[...],
                 preferred_element_type=jnp.float32) + bvu_ref[...]          # (Np, 256) f32
    av = jnp.tanh(vu[:, :ATT_D])
    au = jax.nn.sigmoid(vu[:, ATT_D:])
    gated = av * au                                                          # (Np, 128)

    # attention_weights logit: VPU multiply + lane reduce (XLU slot), not a 1-lane matmul.
    # The bias bw is a constant logit shift that cancels under softmax -> dropped (exact).
    z = jnp.sum(gated * ww_ref[...], axis=-1, keepdims=True)                 # (Np, 1)

    # Mask padded instance rows so a pad row can never set the softmax max shift.
    row = jax.lax.broadcasted_iota(jnp.int32, z.shape, 0)
    z = jnp.where(row < n_valid, z, jnp.float32(-1e30))

    # Per-group softmax + attention-weighted pooling on the MXU.
    # A single global max shift is exact (shift invariance) and overflow-safe.
    e = jnp.exp(z - jnp.max(z, axis=0, keepdims=True))                       # (Np, 1); pads -> 0
    g = g_ref[0]                                                             # (8, Np) 0/1 membership
    num = jnp.dot(g, e * mid, preferred_element_type=jnp.float32)            # (8, 512)
    den = jnp.dot(g, e, preferred_element_type=jnp.float32)                  # (8, 1)
    den = jnp.where(den > 0.0, den, 1.0)                                     # empty padded groups
    out_ref[0] = num / den                                                   # lane-dense (8, 512)


def init_params(key):
    k1, k2, k3, k4, k5 = jax.random.split(key, 5)

    def xavier(k, shape):  # xavier_normal_ on the torch (out,in) weight == same std here
        fan_in, fan_out = shape
        std = (2.0 / (fan_in + fan_out)) ** 0.5
        return std * jax.random.normal(k, shape, dtype=jnp.float32)

    wv = xavier(k2, (INNER_DIM, ATT_D))                       # attention_V Linear
    wu = xavier(k3, (INNER_DIM, ATT_D))                       # attention_U Linear
    return dict(
        # heavy weights stored bf16 (native MXU dtype; halves their HBM fetch)
        w1=xavier(k1, (INPUT_DIM, INNER_DIM)).astype(jnp.bfloat16),      # DimReduction.fc1 (no bias)
        wvu=jnp.concatenate([wv, wu], axis=1).astype(jnp.bfloat16),      # fused V|U weights
        # torch init zeroes Linear biases; use small nonzero values to exercise the add
        bvu=(0.02 * jax.random.normal(k5, (1, 2 * ATT_D))).astype(jnp.float32),
        ww=xavier(k4, (1, ATT_D)),                                       # attention_weights, lane-dense
    )


def dtfd_forward(x, params, perms):
    """x: (B, N, INPUT_DIM) — B bags, each equivalent to one eval-mode DTFD.forward call.
    perms: length-B list of instance permutations (stand-in for random.shuffle).
    Returns stacked slide_d_feat of shape (B, GROUP, INNER_DIM)."""
    B, N, _ = x.shape
    npad = max(16, -(-N // 16) * 16)                 # bf16 packs 16 rows per sublane tile

    # group-membership matrices built from np.array_split of the shuffled indices (glue)
    g = np.zeros((B, GROUP_PAD, npad), np.float32)
    for b in range(B):
        for gi, c in enumerate(np.array_split(np.asarray(perms[b]), GROUP)):
            g[b, gi, np.asarray(c, np.int64)] = 1.0
    g = jnp.asarray(g)

    # cast x to bf16 at the wrapper (halves its DMA); pad instance rows with zeros
    xb = x.astype(jnp.bfloat16)
    if npad != N:
        xb = jnp.zeros((B, npad, INPUT_DIM), jnp.bfloat16).at[:, :N].set(xb)

    flops = 2 * B * npad * (INPUT_DIM * INNER_DIM + INNER_DIM * 2 * ATT_D + ATT_D
                            + GROUP_PAD * (INNER_DIM + 1))
    bytes_accessed = (xb.size * 2 + g.size * 4
                      + params["w1"].size * 2 + params["wvu"].size * 2
                      + params["bvu"].size * 4 + params["ww"].size * 4
                      + B * GROUP_PAD * INNER_DIM * 4)

    grid_spec = pltpu.PrefetchScalarGridSpec(
        num_scalar_prefetch=0,
        grid=(B,),
        in_specs=[
            pl.BlockSpec((1, npad, INPUT_DIM), lambda b: (b, 0, 0)),      # per-bag instances
            pl.BlockSpec((1, GROUP_PAD, npad), lambda b: (b, 0, 0)),      # per-bag membership
            pl.BlockSpec((INPUT_DIM, INNER_DIM), lambda b: (0, 0)),       # weights: VMEM-resident
            pl.BlockSpec((INNER_DIM, 2 * ATT_D), lambda b: (0, 0)),
            pl.BlockSpec((1, 2 * ATT_D), lambda b: (0, 0)),
            pl.BlockSpec((1, ATT_D), lambda b: (0, 0)),
        ],
        out_specs=pl.BlockSpec((1, GROUP_PAD, INNER_DIM), lambda b: (b, 0, 0)),
    )

    out = pl.pallas_call(
        functools.partial(dtfd_fused_kernel, n_valid=N),
        out_shape=jax.ShapeDtypeStruct((B, GROUP_PAD, INNER_DIM), jnp.float32),
        grid_spec=grid_spec,
        compiler_params=pltpu.CompilerParams(
            dimension_semantics=("parallel",)),            # v7x: shard bags over 2 TCs
        cost_estimate=pl.CostEstimate(
            flops=flops,
            transcendentals=B * npad * (2 * ATT_D + 1),
            bytes_accessed=bytes_accessed),
    )(xb, g, params["w1"], params["wvu"], params["bvu"], params["ww"])
    return out[:, :GROUP]


def ref_forward(x, params, perms):
    """Pure-JAX reference mirroring DTFD.test_forward (distill='AFS') per bag.
    Matmul inputs are cast to bf16 (f32 accumulate) to mirror the kernel's MXU numerics."""
    outs = []
    for b in range(x.shape[0]):
        xb = x[b].astype(jnp.bfloat16)
        mid = jnp.maximum(
            jnp.dot(xb, params["w1"], preferred_element_type=jnp.float32), 0.0)
        vu = jnp.dot(mid.astype(jnp.bfloat16), params["wvu"],
                     preferred_element_type=jnp.float32) + params["bvu"]
        av = jnp.tanh(vu[:, :ATT_D])
        au = jax.nn.sigmoid(vu[:, ATT_D:])
        aa = jnp.sum(av * au * params["ww"], axis=-1)      # isNorm=False logits; bw == 0
        bag = []
        for c in np.array_split(np.asarray(perms[b]), GROUP):
            idx = jnp.asarray(np.asarray(c, dtype=np.int32))
            tmid = mid[idx]
            taa = jax.nn.softmax(aa[idx], axis=0)
            bag.append(jnp.sum(tmid * taa[:, None], axis=0))
        outs.append(jnp.stack(bag, axis=0))
    return jnp.stack(outs, axis=0)


if __name__ == "__main__":
    key = jax.random.PRNGKey(0)
    kx, kp = jax.random.split(key)

    B = 4                                             # bags batched behind the grid axis
    N = 40                                            # instances per bag
    x = jax.random.normal(kx, (B, N, INPUT_DIM), dtype=jnp.float32)
    params = init_params(kp)

    # deterministic stand-in for random.shuffle in test_forward (one shuffle per bag)
    perms = [np.random.RandomState(b).permutation(N) for b in range(B)]

    out = jax.block_until_ready(dtfd_forward(x, params, perms))
    ref = ref_forward(x, params, perms)

    assert out.shape == (B, GROUP, INNER_DIM)
    np.testing.assert_allclose(np.asarray(out), np.asarray(ref), rtol=2e-3, atol=2e-3)
    print("KERNEL_OK")
</pallas_src>

<mosaic_0001>
module attributes {stable_mosaic.version = 11 : i64} {
  func.func @dtfd_fused_kernel(%arg0: i32, %arg1: memref<1x48x1024xbf16, #tpu.memory_space<vmem>>, %arg2: memref<1x8x48xf32, #tpu.memory_space<vmem>>, %arg3: memref<1024x512xbf16, #tpu.memory_space<vmem>>, %arg4: memref<512x256xbf16, #tpu.memory_space<vmem>>, %arg5: memref<1x256xf32, #tpu.memory_space<vmem>>, %arg6: memref<1x128xf32, #tpu.memory_space<vmem>>, %arg7: memref<1x8x512xf32, #tpu.memory_space<vmem>>) attributes {dimension_semantics = [#tpu.dimension_semantics<parallel>], iteration_bounds = array<i64: 4>, scalar_prefetch = 0 : i64, scratch_operands = 0 : i64, tpu.core_type = #tpu.core_type<tc>, window_params = [{transform_indices = @transform_0, window_bounds = array<i64: 1, 48, 1024>}, {transform_indices = @transform_1, window_bounds = array<i64: 1, 8, 48>}, {pipeline_mode = #tpu.pipeline_mode<synchronous>, transform_indices = @transform_2, window_bounds = array<i64: 1024, 512>}, {pipeline_mode = #tpu.pipeline_mode<synchronous>, transform_indices = @transform_3, window_bounds = array<i64: 512, 256>}, {pipeline_mode = #tpu.pipeline_mode<synchronous>, transform_indices = @transform_4, window_bounds = array<i64: 1, 256>}, {pipeline_mode = #tpu.pipeline_mode<synchronous>, transform_indices = @transform_5, window_bounds = array<i64: 1, 128>}, {transform_indices = @transform_6, window_bounds = array<i64: 1, 8, 512>}]} {
    %c0 = arith.constant 0 : index
    %c0_0 = arith.constant 0 : index
    %c0_1 = arith.constant 0 : index
    %0 = vector.load %arg1[%c0, %c0_0, %c0_1] : memref<1x48x1024xbf16, #tpu.memory_space<vmem>>, vector<1x48x1024xbf16>
    %1 = vector.shape_cast %0 : vector<1x48x1024xbf16> to vector<48x1024xbf16>
    %c0_2 = arith.constant 0 : index
    %c0_3 = arith.constant 0 : index
    %2 = vector.load %arg3[%c0_2, %c0_3] : memref<1024x512xbf16, #tpu.memory_space<vmem>>, vector<1024x512xbf16>
    %cst = arith.constant dense<0.000000e+00> : vector<48x512xf32>
    %3 = tpu.matmul %1, %2, %cst {dimension_numbers = #tpu.dot_dimension_numbers<[1], [0], [0], [1], [0, 0, 1, 1], [], []>} : vector<48x1024xbf16>, vector<1024x512xbf16>, vector<48x512xf32> -> vector<48x512xf32>
    %cst_4 = arith.constant 0.000000e+00 : f32
    %4 = vector.broadcast %cst_4 : f32 to vector<48x512xf32>
    %5 = arith.maximumf %3, %4 : vector<48x512xf32>
    %6 = arith.truncf %5 : vector<48x512xf32> to vector<48x512xbf16>
    %c0_5 = arith.constant 0 : index
    %c0_6 = arith.constant 0 : index
    %7 = vector.load %arg4[%c0_5, %c0_6] : memref<512x256xbf16, #tpu.memory_space<vmem>>, vector<512x256xbf16>
    %cst_7 = arith.constant dense<0.000000e+00> : vector<48x256xf32>
    %8 = tpu.matmul %6, %7, %cst_7 {dimension_numbers = #tpu.dot_dimension_numbers<[1], [0], [0], [1], [0, 0, 1, 1], [], []>} : vector<48x512xbf16>, vector<512x256xbf16>, vector<48x256xf32> -> vector<48x256xf32>
    %c0_8 = arith.constant 0 : index
    %c0_9 = arith.constant 0 : index
    %9 = vector.load %arg5[%c0_8, %c0_9] : memref<1x256xf32, #tpu.memory_space<vmem>>, vector<1x256xf32>
    %10 = vector.broadcast %9 : vector<1x256xf32> to vector<48x256xf32>
    %11 = arith.addf %8, %10 : vector<48x256xf32>
    %12 = vector.extract_strided_slice %11 {offsets = [0, 0], sizes = [48, 128], strides = [1, 1]} : vector<48x256xf32> to vector<48x128xf32>
    %13 = math.tanh %12 : vector<48x128xf32>
    %14 = vector.extract_strided_slice %11 {offsets = [0, 128], sizes = [48, 128], strides = [1, 1]} : vector<48x256xf32> to vector<48x128xf32>
    %15 = arith.negf %14 : vector<48x128xf32>
    %16 = math.exp %15 : vector<48x128xf32>
    %cst_10 = arith.constant 1.000000e+00 : f32
    %17 = vector.broadcast %cst_10 : f32 to vector<48x128xf32>
    %18 = arith.addf %17, %16 : vector<48x128xf32>
    %19 = arith.divf %17, %18 : vector<48x128xf32>
    %20 = arith.mulf %13, %19 : vector<48x128xf32>
    %c0_11 = arith.constant 0 : index
    %c0_12 = arith.constant 0 : index
    %21 = vector.load %arg6[%c0_11, %c0_12] : memref<1x128xf32, #tpu.memory_space<vmem>>, vector<1x128xf32>
    %22 = vector.broadcast %21 : vector<1x128xf32> to vector<48x128xf32>
    %23 = arith.mulf %20, %22 : vector<48x128xf32>
    %cst_13 = arith.constant dense<0.000000e+00> : vector<48xf32>
    %24 = vector.multi_reduction <add>, %23, %cst_13 [1] : vector<48x128xf32> to vector<48xf32>
    %25 = vector.shape_cast %24 : vector<48xf32> to vector<48x1xf32>
    %26 = tpu.iota {dimensions = array<i32: 0>} : vector<48x1xi32>
    %c40_i32 = arith.constant 40 : i32
    %27 = vector.broadcast %c40_i32 : i32 to vector<48x1xi32>
    %28 = arith.cmpi slt, %26, %27 : vector<48x1xi32>
    %cst_14 = arith.constant -1.000000e+30 : f32
    %29 = vector.broadcast %cst_14 : f32 to vector<48x1xf32>
    %30 = arith.select %28, %25, %29 : vector<48x1xi1>, vector<48x1xf32>
    %cst_15 = arith.constant dense<0xFF800000> : vector<1xf32>
    %31 = vector.multi_reduction <maximumf>, %30, %cst_15 [0] : vector<48x1xf32> to vector<1xf32>
    %32 = vector.shape_cast %31 : vector<1xf32> to vector<1x1xf32>
    %33 = vector.broadcast %32 : vector<1x1xf32> to vector<48x1xf32>
    %34 = arith.subf %30, %33 : vector<48x1xf32>
    %35 = math.exp %34 : vector<48x1xf32>
    %c0_16 = arith.constant 0 : index
    %c0_17 = arith.constant 0 : index
    %c0_18 = arith.constant 0 : index
    %36 = vector.load %arg2[%c0_16, %c0_17, %c0_18] : memref<1x8x48xf32, #tpu.memory_space<vmem>>, vector<1x8x48xf32>
    %37 = vector.shape_cast %36 : vector<1x8x48xf32> to vector<8x48xf32>
    %38 = vector.broadcast %35 : vector<48x1xf32> to vector<48x512xf32>
    %39 = arith.mulf %38, %5 : vector<48x512xf32>
    %cst_19 = arith.constant dense<0.000000e+00> : vector<8x512xf32>
    %40 = tpu.matmul %37, %39, %cst_19 {dimension_numbers = #tpu.dot_dimension_numbers<[1], [0], [0], [1], [0, 0, 1, 1], [], []>} : vector<8x48xf32>, vector<48x512xf32>, vector<8x512xf32> -> vector<8x512xf32>
    %cst_20 = arith.constant dense<0.000000e+00> : vector<8x1xf32>
    %41 = tpu.matmul %37, %35, %cst_20 {dimension_numbers = #tpu.dot_dimension_numbers<[1], [0], [0], [1], [0, 0, 1, 1], [], []>} : vector<8x48xf32>, vector<48x1xf32>, vector<8x1xf32> -> vector<8x1xf32>
    %cst_21 = arith.constant 0.000000e+00 : f32
    %42 = vector.broadcast %cst_21 : f32 to vector<8x1xf32>
    %43 = arith.cmpf ogt, %41, %42 : vector<8x1xf32>
    %cst_22 = arith.constant 1.000000e+00 : f32
    %44 = vector.broadcast %cst_22 : f32 to vector<8x1xf32>
    %45 = arith.select %43, %41, %44 : vector<8x1xi1>, vector<8x1xf32>
    %46 = vector.broadcast %45 : vector<8x1xf32> to vector<8x512xf32>
    %47 = arith.divf %40, %46 : vector<8x512xf32>
    %c0_23 = arith.constant 0 : index
    %c0_24 = arith.constant 0 : index
    %c0_25 = arith.constant 0 : index
    %48 = vector.load %arg7[%c0_23, %c0_24, %c0_25] : memref<1x8x512xf32, #tpu.memory_space<vmem>>, vector<1x8x512xf32>
    %49 = vector.shape_cast %48 : vector<1x8x512xf32> to vector<8x512xf32>
    %50 = vector.shape_cast %47 : vector<8x512xf32> to vector<1x8x512xf32>
    tpu.vector_store %arg7[%c0_23, %c0_24, %c0_25], %50 {strides = array<i32>} : memref<1x8x512xf32, #tpu.memory_space<vmem>>, vector<1x8x512xf32>,
    return
  }
  func.func @transform_0(%arg0: i32) -> (i32, i32, i32) {
    %c0_i32 = arith.constant 0 : i32
    %c0_i32_0 = arith.constant 0 : i32
    %c0_i32_1 = arith.constant 0 : i32
    return %arg0, %c0_i32, %c0_i32_0 : i32, i32, i32
  }
  func.func @transform_1(%arg0: i32) -> (i32, i32, i32) {
    %c0_i32 = arith.constant 0 : i32
    %c0_i32_0 = arith.constant 0 : i32
    %c0_i32_1 = arith.constant 0 : i32
    return %arg0, %c0_i32, %c0_i32_0 : i32, i32, i32
  }
  func.func @transform_2(%arg0: i32) -> (i32, i32) {
    %c0_i32 = arith.constant 0 : i32
    %c0_i32_0 = arith.constant 0 : i32
    %c0_i32_1 = arith.constant 0 : i32
    return %c0_i32, %c0_i32_0 : i32, i32
  }
  func.func @transform_3(%arg0: i32) -> (i32, i32) {
    %c0_i32 = arith.constant 0 : i32
    %c0_i32_0 = arith.constant 0 : i32
    %c0_i32_1 = arith.constant 0 : i32
    return %c0_i32, %c0_i32_0 : i32, i32
  }
  func.func @transform_4(%arg0: i32) -> (i32, i32) {
    %c0_i32 = arith.constant 0 : i32
    %c0_i32_0 = arith.constant 0 : i32
    %c0_i32_1 = arith.constant 0 : i32
    return %c0_i32, %c0_i32_0 : i32, i32
  }
  func.func @transform_5(%arg0: i32) -> (i32, i32) {
    %c0_i32 = arith.constant 0 : i32
    %c0_i32_0 = arith.constant 0 : i32
    %c0_i32_1 = arith.constant 0 : i32
    return %c0_i32, %c0_i32_0 : i32, i32
  }
  func.func @transform_6(%arg0: i32) -> (i32, i32, i32) {
    %c0_i32 = arith.constant 0 : i32
    %c0_i32_0 = arith.constant 0 : i32
    %c0_i32_1 = arith.constant 0 : i32
    return %arg0, %c0_i32, %c0_i32_0 : i32, i32, i32
  }
}

</mosaic_0001>

<bundles_post_ra>
// kernel: tpu_custom_call.1
= control target key start
LH: loop header
LB: loop body
LE: loop exit
PB: predicated region body
PF: predicated region fallthrough
CT: control target
= control target key end

     0   :  { %s5470_s0 = inlined_call_operand.hbm [shape: bf16[4,48,1024], index: 0, kind: input, shape index: {}]   ;;  %s5471_s1 = inlined_call_operand.hbm [shape: f32[4,8,48], index: 1, kind: input, shape index: {}]   ;;  %s5472_s2 = inlined_call_operand.hbm [shape: bf16[1024,512], index: 2, kind: input, shape index: {}]   ;;  %s5473_s3 = inlined_call_operand.hbm [shape: bf16[512,256], index: 3, kind: input, shape index: {}]   ;;  %s5474_s4 = inlined_call_operand.vmem [shape: f32[1,256], index: 4, kind: input, shape index: {}]   ;;  %s5475_s5 = inlined_call_operand.vmem [shape: f32[1,128], index: 5, kind: input, shape index: {}]   ;;  %s5476_s6 = inlined_call_operand.hbm [shape: f32[4,8,512], index: 6, kind: output, shape index: {}]  }
   0x1   :  { %5498 = sst [smem:[#allocation17_spill]] %s5470_s0 }
   0x2   :  { %5499 = sst [smem:[#allocation18_spill]] %s5472_s2 }
   0x3   :  { %5500 = sst [smem:[#allocation19_spill]] %s5473_s3 }
   0x4   :  { %11 = vsyncpa [#allocation3], 0 }
   0x5   :  { %13 = vsyncpa [#allocation3 + $0x1], 0 }
   0x6   :  { %14 = vsyncpa [#allocation6], 0 }
   0x7   :  { %16 = vsyncpa [#allocation6 + $0x1], 0 }
   0x8   :  { %17 = vsyncpa [#allocation9], 0 }
   0x9   :  { %18 = vsyncpa [#allocation4], 0 }
   0xa   :  { %20 = vsyncpa [#allocation4 + $0x1], 0  ;;  %s4823_s21 = smov 0   ;;  %s4825_s22 = smov 0  }
   0xb   :  { %s4827_s23 = smov 0   ;;  %s4829_s24 = smov 0  }
   0xc LB: > { %s4844_s25 = sadd.s32 4294967295, %s4772_s24   ;;  %s3583_s26 = sadd.s32 4294967294, %s4772_s24   ;;  %s4772_s24 = sphi %s4829_s24, %s5542_s24   ;;  %s4768_s23 = sphi %s4827_s23, %s5541_s23   ;;  %s4764_s22 = sphi %s4825_s22, %s5540_s22   ;;  %s4760_s21 = sphi %s4823_s21, %s5539_s21  }
   0xd   : > { %p46_p0 = scmp.ne.s32.totalorder %s4764_s22, %s4760_s21  ;;  %p5477_p1 = scmp.eq.s32.totalorder %s4844_s25, 0 }
   0xe   : > { %p186_p3 = scmp.eq.s32.totalorder %s3583_s26, 3  ;;  %p3584_p5 = scmp.ge.s32.totalorder %s4772_s24, 1 }
   0xf   : > { %p4853_p4 = por %p5477_p1, %p46_p0  ;;  %p193_p7 = scmp.lt.s32.totalorder %s4772_s24, 5 }
  0x10   : > { %p4858_p6 = por %p186_p3, %p46_p0  ;;  %s4774_s30 = smov [#allocation7]  }
  0x11   : > { %s5501_s27 = scalar_select %p4853_p4, 1, 0 }
  0x12   : > { %s5502_s28 = scalar_select %p4858_p6, 1, 0 }
  0x13   : > { %p4863_p8 = pnand %p3584_p5, %p193_p7  ;;  %s205_s7 = sshll.u32 %s4774_s30, 4  ;;  %s206_s7 = int_to_ptr.vmem [resolvable:$true] %s205_s7 }
  0x14   : > { %s4775_s9 = smov [#allocation8]   ;;  %s4599_s11 = scalar_lea.vmem %s206_s7, 32768 }
  0x15   : > { %s5503_s29 = scalar_select %p4863_p8, 1, 0 }
  0x16   : > { %p3995_p9 = pneg %p4863_p8  ;;  %s218_s10 = sshll.u32 %s4775_s9, 4  ;;  %s219_s10 = int_to_ptr.vmem [resolvable:$true] %s218_s10 }
  0x17   : > { %p4600_p12 = scmp.ne.s32.totalorder %s206_s7, %s4599_s11  ;;  %p4607_p3 = scmp.lt.s32.totalorder %s206_s7, %s206_s7 }
  0x18   : > { %p4871_p10 = pnand %p3995_p9, %p5477_p1  ;;  %p4608_p5 = scmp.lt.s32.totalorder %s4599_s11, %s4599_s11 }
  0x1a   : > { %p4590_p11 = pneg %p4871_p10  ;;  %p4609_p7 = por %p4608_p5, %p4607_p3 }
  0x1c   : > { %p4602_p13 = pnand %p4600_p12, %p4590_p11 }
  0x1e   : > { %p4603_p0 = pneg %p4602_p13 }
  0x20   : > { %p4610_p9 = pnand %p4609_p7, %p4603_p0 }
  0x22   : > { %4613 = shalt.err (!%p4610_p9)
}
  0x23   : > { %s4776_s12 = smov 256   ;;  %s4777_s13 = smov 16  }
  0x24   : > { %s5505_s2 = sld [smem:[#allocation18_spill]]  ;;  %s4625_s16 = scalar_lea.vmem %s219_s10, 8192 }
  0x25   : > { %p4626_p1 = scmp.ne.s32.totalorder %s219_s10, %s4625_s16  ;;  %p4633_p2 = scmp.lt.s32.totalorder %s219_s10, %s219_s10 }
  0x26   : > { %p4634_p6 = scmp.lt.s32.totalorder %s4625_s16, %s4625_s16 }
  0x27   : > { %p4628_p12 = pnand %p4626_p1, %p4590_p11 }
  0x28   : > { %p4635_p3 = por %p4634_p6, %p4633_p2 }
  0x29   : > { %p4629_p13 = pneg %p4628_p12 }
  0x2a   : > { %3998 = dma.hbm_to_vmem [thread:$0]  (!%p4871_p10), %s5505_s2, 32768, %s206_s7, [#allocation6], %s4776_s12, %s4776_s12, %s4777_s13  }
  0x2b   : > { %p4636_p0 = pnand %p4635_p3, %p4629_p13 }
  0x2d   : > { %4639 = shalt.err (!%p4636_p0)
}
  0x2e   : > { %s4778_s17 = smov 128   ;;  %s4779_s18 = smov 8  }
  0x2f   : > { %s5506_s3 = sld [smem:[#allocation19_spill]]  ;;  %s4894_s26 = sadd.s32 1, %s4772_s24  }
  0x30   : > { %s30_s30 = ssub.s32 %s4772_s24, %s4894_s26  ;;  %s33_s7 = sadd.s32 1, %s4768_s23 }
  0x31   : > { %p31_p1 = scmp.eq.s32.totalorder %s30_s30, 0  ;;  %p40_p2 = scmp.ne.s32.totalorder %s4768_s23, %s4764_s22 }
  0x32   : > { %p41_p6 = scmp.eq.s32.totalorder %s4772_s24, 0  ;;  %p5508_p5 = scmp.eq.s32.totalorder %s4844_s25, 3 }
  0x33   : > { %s4903_s9 = scalar_select %p31_p1, %s4768_s23, %s33_s7  }
  0x34   : > { %p42_p11 = por %p41_p6, %p40_p2  ;;  %p4907_p7 = por %p5508_p5, %p40_p2 }
  0x35   : > { %4001 = dma.hbm_to_vmem [thread:$0]  (!%p4871_p10), %s5506_s3, 8192, %s219_s10, [#allocation9], %s4778_s17, %s4778_s17, %s4779_s18  }
  0x36   : > { %5507 = sst [smem:[#allocation16_spill]] %s4903_s9  ;;  %p4015_p9 = scmp.lt.s32.totalorder %s4772_s24, 4 }
  0x37   : > { %s5509_s11 = scalar_select %p4907_p7, 1, 0 }
  0x38   : > { %s4913_s8 = sand.u32 1, %s4768_s23   ;;  %s3979_s12 = smul.u32 3072, %s4772_s24 }
  0x39   : > { %s3978_s10 = smul.u32 192, %s4913_s8  ;;  %p4917_p10 = pnand %p4015_p9, %p42_p11 }
  0x3a   : > { %s5511_s0 = sld [smem:[#allocation17_spill]]  ;;  %s239_s20 = scalar_lea.sflag [#allocation3], %s4913_s8 }
  0x3b   : > { %s242_s17 = scalar_lea.vmem [#allocation2], %s3978_s10  ;;  %p4642_p13 = pneg %p4917_p10 }
  0x3c   : > { %s249_s18 = sshll.u32 %s242_s17, 4  ;;  %s4926_s18 = int_to_ptr.vmem [resolvable:$true] %s249_s18 }
  0x40   : > { %s4924_s16 = scalar_lea.hbm %s5511_s0, %s3979_s12  ;;  %s4645_s14 = scalar_lea.hbm %s5511_s0, 12288 }
  0x41   : > { %s4640_s30 = scalar_lea.hbm %s4924_s16, 3072  ;;  %p4646_p1 = scmp.lt.s32.totalorder %s4924_s16, %s5511_s0 }
  0x42   : > { %p4641_p12 = scmp.ne.s32.totalorder %s4924_s16, %s4640_s30  ;;  %p4647_p2 = scmp.lt.s32.totalorder %s4645_s14, %s4640_s30 }
  0x44   : > { %p4643_p3 = pnand %p4642_p13, %p4641_p12  ;;  %p4648_p6 = por %p4647_p2, %p4646_p1 }
  0x46   : > { %p4644_p0 = pneg %p4643_p3 }
  0x48   : > { %p4649_p11 = pnand %p4648_p6, %p4644_p0 }
  0x4a   : > { %4652 = shalt.err (!%p4649_p11)
}
  0x4b   : > { %s4653_s10 = scalar_lea.vmem %s4926_s18, 3072  ;;  %s4780_s17 = smov [#allocation2]  }
  0x4c   : > { %p4654_p5 = scmp.ne.s32.totalorder %s4926_s18, %s4653_s10  ;;  %s4658_s7 = sshll.u32 %s4780_s17, 4  ;;  %s4659_s7 = int_to_ptr.vmem [resolvable:$false] %s4658_s7 }
  0x4d   : > { %s4660_s12 = scalar_lea.vmem %s4659_s7, 6144  ;;  %p4661_p3 = scmp.lt.s32.totalorder %s4926_s18, %s4659_s7 }
  0x4e   : > { %p4656_p9 = pnand %p4654_p5, %p4642_p13  ;;  %p4662_p7 = scmp.lt.s32.totalorder %s4660_s12, %s4653_s10 }
  0x50   : > { %p4657_p12 = pneg %p4656_p9  ;;  %p4663_p4 = por %p4662_p7, %p4661_p3 }
  0x52   : > { %p4664_p1 = pnand %p4663_p4, %p4657_p12 }
  0x54   : > { %4667 = shalt.err (!%p4664_p1)
}
  0x55   : > { %s4781_s2 = smov 512   ;;  %s4782_s30 = smov 32  }
  0x56   : > { %4005 = dma.hbm_to_vmem [thread:$0]  (!%p4917_p10), %s4924_s16, 3072, %s4926_s18, %s239_s20, %s4781_s2, %s4781_s2, %s4782_s30  }
  0x57   : > { %s3589_s14 = sshll.u32 %s4913_s8, 3  ;;  %s3590_s15 = sshll.u32 %s4772_s24, 7 }
  0x58   : > { %s4961_s7 = scalar_lea.hbm %s5471_s1, %s3590_s15  ;;  %s263_s12 = scalar_lea.vmem [#allocation5], %s3589_s14 }
  0x59   : > { %s270_s19 = sshll.u32 %s263_s12, 4  ;;  %s5512_s0 = sand.u32 1, %s4772_s24   ;;  %s271_s19 = int_to_ptr.vmem [resolvable:$true] %s270_s19 }
  0x5a   : > { %s260_s3 = scalar_lea.sflag [#allocation6], %s5512_s0  ;;  %s4668_s9 = scalar_lea.hbm %s4961_s7, 128 }
  0x5b   : > { %p4669_p4 = scmp.ne.s32.totalorder %s4961_s7, %s4668_s9  ;;  %s4673_s18 = scalar_lea.hbm %s5471_s1, 512 }
  0x5c   : > { %p4674_p2 = scmp.lt.s32.totalorder %s4961_s7, %s5471_s1  ;;  %p4675_p6 = scmp.lt.s32.totalorder %s4673_s18, %s4668_s9 }
  0x5d   : > { %p4671_p7 = pnand %p4669_p4, %p4642_p13 }
  0x5e   : > { %p4676_p11 = por %p4675_p6, %p4674_p2 }
  0x5f   : > { %p4672_p0 = pneg %p4671_p7 }
  0x61   : > { %p4677_p5 = pnand %p4676_p11, %p4672_p0 }
  0x63   : > { %4680 = shalt.err (!%p4677_p5)
}
  0x64   : > { %s4681_s30 = scalar_lea.vmem %s271_s19, 128  ;;  %s4783_s0 = smov [#allocation5]  }
  0x65   : > { %p4682_p9 = scmp.ne.s32.totalorder %s271_s19, %s4681_s30  ;;  %s4686_s14 = sshll.u32 %s4783_s0, 4  ;;  %s4687_s14 = int_to_ptr.vmem [resolvable:$false] %s4686_s14 }
  0x66   : > { %s4688_s15 = scalar_lea.vmem %s4687_s14, 256  ;;  %p4689_p1 = scmp.lt.s32.totalorder %s271_s19, %s4687_s14 }
  0x67   : > { %p4684_p12 = pnand %p4682_p9, %p4642_p13  ;;  %p4690_p4 = scmp.lt.s32.totalorder %s4688_s15, %s4681_s30 }
  0x69   : > { %p4685_p3 = pneg %p4684_p12  ;;  %p4691_p7 = por %p4690_p4, %p4689_p1 }
  0x6b   : > { %p4692_p8 = pnand %p4691_p7, %p4685_p3 }
  0x6d   : > { %4695 = shalt.err (!%p4692_p8)
}
  0x6e   : > { %4008 = dma.hbm_to_vmem [thread:$0]  (!%p4917_p10), %s4961_s7, 128, %s271_s19, %s260_s3  }
  0x6f   : > { %p5513_p0 = scmp.ne.s32.totalorder %s5503_s29, 0 }
  0x70   : > { %s4986_s9 = sand.u32 (!%p5513_p0), 1, %s4764_s22   ;;  %p5514_p13 = scmp.ne.s32.totalorder (!%p5513_p0), %s5501_s27, 0 }
  0x71   : > { %279 = sbr.rel (%p5513_p0) target bundleno = 1395 (0x573), region = 44  ;;  %s282_s10 = scalar_lea.sflag (!%p5513_p0), [#allocation3], %s4986_s9 }
  0x72   : > { %s3980_s17 = smul.u32 (!%p5513_p0), 192, %s4986_s9 }
  0x74   : > { %s4990_s12 = scalar_lea.vmem (!%p5513_p0), [#allocation2], %s3980_s17 }
  0x76   : > { %4739 = dma.done.wait (%p5514_p13), %s282_s10, 3072  }
  0x77   : > { %4741 = vsyncadd (%p5514_p13), %s282_s10, 4294964224  ;;  %s290_s3 = sand.u32 1, %s4844_s25   ;;  %s3592_s29 = sshll.u32 %s4986_s9, 3 }
  0x78   : > { %s291_s13 = scalar_lea.sflag [#allocation6], %s290_s3  ;;  %s4998_s19 = scalar_lea.vmem [#allocation5], %s3592_s29 }
  0x79   : > { %4743 = dma.done.wait (%p5514_p13), %s291_s13, 128  }
  0x7a   : > { %4745 = vsyncadd (%p5514_p13), %s291_s13, 4294967168  ;;  %p5515_p8 = scmp.eq.s32.totalorder %s4844_s25, 0 }
  0x7c   : > { %4747 = dma.done.wait (%p5515_p8), [#allocation6], 32768   ;;  %p5516_p10 = pmov %p5515_p8 }
  0x7d   : > { %p5517_p2 = pmov %p5515_p8 }
  0x7e   : > { %4749 = vsyncadd (%p5516_p10), [#allocation6], 4294934528 }
  0x7f   : > { %4751 = dma.done.wait (%p5517_p2), [#allocation9], 8192   ;;  %p5518_p6 = pmov %p5517_p2 }
  0x80   : > { %v4064_v0 = vld [vmem:[#allocation7 + $0xe4] ss:$16 sps:$4 sm:$0xff]   ;;  %v4068_v2 = vld [vmem:[#allocation7 + $0xe0] ss:$16 sps:$4 sm:$0xff]   ;;  %v337_v50 = vld [vmem:[%s4990_s12 + $0x8] sm:$0xff]  ;;  %vm3224_vm0 = vcmask 392192  }
  0x81   : > { %4753 = vsyncadd (%p5518_p6), [#allocation9], 4294959104  ;;  %v4066_v1 = vld [vmem:[#allocation7 + $0x2e4] ss:$16 sps:$4 sm:$0xff]   ;;  %2016 = vmatprep.subr.bf16.mxu0 %v4064_v0  ;;  %v4069_v3 = vld [vmem:[#allocation7 + $0x2e0] ss:$16 sps:$4 sm:$0xff]  }
  0x82   : > { %2079 = vmatprep.subr.bf16.mxu1 %v4066_v1  ;;  %v4070_v4 = vld [vmem:[#allocation7 + $0xc4] ss:$16 sps:$4 sm:$0xff]   ;;  %2017 = vmatpush1.bf16.msra.mxu0 %v4068_v2  ;;  %v4074_v6 = vld [vmem:[#allocation7 + $0xc0] ss:$16 sps:$4 sm:$0xff]   ;;  %v341_v51 = vld [vmem:[%s4990_s12 + $0x28] sm:$0xff]  ;;  %vm4785_vm1 = vmmov 0  }
  0x83   : > { %2080 = vmatpush1.bf16.msra.mxu1 %v4069_v3  ;;  %v4072_v5 = vld [vmem:[#allocation7 + $0x2c4] ss:$16 sps:$4 sm:$0xff]   ;;  %2018 = vmatprep.subr.bf16.mxu0 %v4070_v4  ;;  %v4075_v7 = vld [vmem:[#allocation7 + $0x2c0] ss:$16 sps:$4 sm:$0xff]   ;;  %v5018_v55 = vcombine.high %v337_v50, %v341_v51  ;;  %s3595_s18 = sshll.u32 %s4986_s9, 5  ;;  %s3955_s20 = sshll.u32 %s4844_s25, 9 }
  0x84   : > { %2081 = vmatprep.subr.bf16.mxu1 %v4072_v5  ;;  %v4076_v8 = vld [vmem:[#allocation7 + $0xa4] ss:$16 sps:$4 sm:$0xff]   ;;  %v4080_v10 = vld [vmem:[#allocation7 + $0xa0] ss:$16 sps:$4 sm:$0xff]   ;;  %s335_s2 = scalar_lea.vmem [#allocation10], %s3595_s18  ;;  %s5428_s15 = scalar_lea.hbm %s5476_s6, %s3955_s20 }
  0x85   : > { %v4078_v9 = vld [vmem:[#allocation7 + $0x2a4] ss:$16 sps:$4 sm:$0xff]   ;;  %v4081_v11 = vld [vmem:[#allocation7 + $0x2a0] ss:$16 sps:$4 sm:$0xff]   ;;  %2111 = vmatprep.mubr.bf16.mxu1 %v5018_v55  ;;  %s3471_s30 = sshll.u32 %s335_s2, 4  ;;  %s3457_s25 = scalar_lea.sflag [#allocation4], %s4986_s9  ;;  %s5430_s30 = int_to_ptr.vmem [resolvable:$true] %s3471_s30 }
  0x86   : > { %2019 = vmatpush1.bf16.msra.mxu0 %v4074_v6  ;;  %v4082_v12 = vld [vmem:[#allocation7 + $0x84] ss:$16 sps:$4 sm:$0xff]   ;;  %v4086_v14 = vld [vmem:[#allocation7 + $0x80] ss:$16 sps:$4 sm:$0xff]   ;;  %s4696_s17 = scalar_lea.vmem %s5430_s30, 512  ;;  %p5536_p5 = scmp.ne.s32.totalorder %s5509_s11, 0 }
  0x87   : > { %2082 = vmatpush1.bf16.msra.mxu1 %v4075_v7  ;;  %2020 = vmatprep.subr.bf16.mxu0 %v4076_v8  ;;  %v4084_v13 = vld [vmem:[#allocation7 + $0x284] ss:$16 sps:$4 sm:$0xff]   ;;  %v4087_v15 = vld [vmem:[#allocation7 + $0x280] ss:$16 sps:$4 sm:$0xff]   ;;  %p4697_p11 = scmp.ne.s32.totalorder %s5430_s30, %s4696_s17  ;;  %s4787_s10 = smov [#allocation10]  }
  0x88   : > { %2083 = vmatprep.subr.bf16.mxu1 %v4078_v9  ;;  %v4088_v16 = vld [vmem:[#allocation7 + $0x64] ss:$16 sps:$4 sm:$0xff]   ;;  %v4092_v18 = vld [vmem:[#allocation7 + $0x60] ss:$16 sps:$4 sm:$0xff]   ;;  %v5024_v9 = vcombine.low %v337_v50, %v341_v51 }
  0x89   : > { %v4090_v17 = vld [vmem:[#allocation7 + $0x264] ss:$16 sps:$4 sm:$0xff]   ;;  %v4093_v19 = vld [vmem:[#allocation7 + $0x260] ss:$16 sps:$4 sm:$0xff]   ;;  %p4698_p9 = pnand %p4697_p11, %p5536_p5 }
  0x8a   : > { %2021 = vmatpush1.bf16.msra.mxu0 %v4080_v10  ;;  %v4094_v20 = vld [vmem:[#allocation7 + $0x44] ss:$16 sps:$4 sm:$0xff]   ;;  %v4098_v22 = vld [vmem:[#allocation7 + $0x40] ss:$16 sps:$4 sm:$0xff]  }
  0x8b   : > { %2084 = vmatpush1.bf16.msra.mxu1 %v4081_v11  ;;  %2022 = vmatprep.subr.bf16.mxu0 %v4082_v12  ;;  %v4096_v21 = vld [vmem:[#allocation7 + $0x244] ss:$16 sps:$4 sm:$0xff]   ;;  %v4099_v23 = vld [vmem:[#allocation7 + $0x240] ss:$16 sps:$4 sm:$0xff]   ;;  %p4699_p12 = pneg %p4698_p9 }
  0x8c   : > { %2085 = vmatprep.subr.bf16.mxu1 %v4084_v13  ;;  %v4100_v24 = vld [vmem:[#allocation7 + $0x24] ss:$16 sps:$4 sm:$0xff]   ;;  %v4104_v26 = vld [vmem:[#allocation7 + $0x20] ss:$16 sps:$4 sm:$0xff]  }
  0x8d   : > { %v4102_v25 = vld [vmem:[#allocation7 + $0x224] ss:$16 sps:$4 sm:$0xff]   ;;  %v4105_v27 = vld [vmem:[#allocation7 + $0x220] ss:$16 sps:$4 sm:$0xff]  }
  0x8e   : > { %2023 = vmatpush1.bf16.msra.mxu0 %v4086_v14  ;;  %v4106_v28 = vld [vmem:[#allocation7 + $0x4] ss:$16 sps:$4 sm:$0xff]   ;;  %v4110_v30 = vld [vmem:[#allocation7] ss:$16 sps:$4 sm:$0xff]  }
  0x8f   : > { %2086 = vmatpush1.bf16.msra.mxu1 %v4087_v15  ;;  %2024 = vmatprep.subr.bf16.mxu0 %v4088_v16  ;;  %v4108_v29 = vld [vmem:[#allocation7 + $0x204] ss:$16 sps:$4 sm:$0xff]   ;;  %v4111_v31 = vld [vmem:[#allocation7 + $0x200] ss:$16 sps:$4 sm:$0xff]  }
  0x90   : > { %2087 = vmatprep.subr.bf16.mxu1 %v4090_v17  ;;  %v4112_v32 = vld [vmem:[#allocation7 + $0x1e4] ss:$16 sps:$4 sm:$0xff]   ;;  %v4116_v34 = vld [vmem:[#allocation7 + $0x1e0] ss:$16 sps:$4 sm:$0xff]  }
  0x91   : > { %v4114_v33 = vld [vmem:[#allocation7 + $0x3e4] ss:$16 sps:$4 sm:$0xff]   ;;  %v4117_v35 = vld [vmem:[#allocation7 + $0x3e0] ss:$16 sps:$4 sm:$0xff]  }
  0x92   : > { %2025 = vmatpush1.bf16.msra.mxu0 %v4092_v18  ;;  %v4118_v36 = vld [vmem:[#allocation7 + $0x1c4] ss:$16 sps:$4 sm:$0xff]   ;;  %v4122_v38 = vld [vmem:[#allocation7 + $0x1c0] ss:$16 sps:$4 sm:$0xff]  }
  0x93   : > { %2088 = vmatpush1.bf16.msra.mxu1 %v4093_v19  ;;  %2026 = vmatprep.subr.bf16.mxu0 %v4094_v20  ;;  %v4120_v37 = vld [vmem:[#allocation7 + $0x3c4] ss:$16 sps:$4 sm:$0xff]   ;;  %v4123_v39 = vld [vmem:[#allocation7 + $0x3c0] ss:$16 sps:$4 sm:$0xff]  }
  0x94   : > { %2089 = vmatprep.subr.bf16.mxu1 %v4096_v21  ;;  %v4124_v40 = vld [vmem:[#allocation7 + $0x1a4] ss:$16 sps:$4 sm:$0xff]   ;;  %v4128_v42 = vld [vmem:[#allocation7 + $0x1a0] ss:$16 sps:$4 sm:$0xff]  }
  0x95   : > { %v4126_v41 = vld [vmem:[#allocation7 + $0x3a4] ss:$16 sps:$4 sm:$0xff]   ;;  %v4129_v43 = vld [vmem:[#allocation7 + $0x3a0] ss:$16 sps:$4 sm:$0xff]  }
  0x96   : > { %2027 = vmatpush1.bf16.msra.mxu0 %v4098_v22  ;;  %v4130_v44 = vld [vmem:[#allocation7 + $0x184] ss:$16 sps:$4 sm:$0xff]   ;;  %v4134_v46 = vld [vmem:[#allocation7 + $0x180] ss:$16 sps:$4 sm:$0xff]  }
  0x97   : > { %2090 = vmatpush1.bf16.msra.mxu1 %v4099_v23  ;;  %2028 = vmatprep.subr.bf16.mxu0 %v4100_v24  ;;  %v4132_v45 = vld [vmem:[#allocation7 + $0x384] ss:$16 sps:$4 sm:$0xff]   ;;  %v4135_v47 = vld [vmem:[#allocation7 + $0x380] ss:$16 sps:$4 sm:$0xff]  }
  0x98   : > { %2091 = vmatprep.subr.bf16.mxu1 %v4102_v25  ;;  %v336_v48 = vld [vmem:[%s4990_s12] sm:$0xff]  ;;  %v345_v25 = vld [vmem:[%s4990_s12 + $0x48] sm:$0xff] }
  0x99   : > { %v340_v49 = vld [vmem:[%s4990_s12 + $0x20] sm:$0xff] }
  0x9a   : > { %2029 = vmatpush1.bf16.msra.mxu0 %v4104_v26  ;;  %v4136_v52 = vld [vmem:[#allocation7 + $0x164] ss:$16 sps:$4 sm:$0xff]   ;;  %v5016_v53 = vcombine.high %v336_v48, %v340_v49  ;;  %v4140_v56 = vld [vmem:[#allocation7 + $0x160] ss:$16 sps:$4 sm:$0xff]   ;;  %v5022_v8 = vcombine.low %v336_v48, %v340_v49  ;;  %v349_v26 = vld [vmem:[%s4990_s12 + $0x68] sm:$0xff] }
  0x9b   : > { %2092 = vmatpush1.bf16.msra.mxu1 %v4105_v27  ;;  %2030 = vmatprep.subr.bf16.mxu0 %v4106_v28  ;;  %v4138_v54 = vld [vmem:[#allocation7 + $0x364] ss:$16 sps:$4 sm:$0xff]   ;;  %v4141_v57 = vld [vmem:[#allocation7 + $0x360] ss:$16 sps:$4 sm:$0xff]  }
  0x9c   : > { %2093 = vmatprep.subr.bf16.mxu1 %v4108_v29  ;;  %2048 = vmatprep.mubr.bf16.mxu0 %v5016_v53  ;;  %v4142_v58 = vld [vmem:[#allocation7 + $0x144] ss:$16 sps:$4 sm:$0xff]   ;;  %v4146_v60 = vld [vmem:[#allocation7 + $0x140] ss:$16 sps:$4 sm:$0xff]   ;;  %v5034_v29 = vcombine.high %v345_v25, %v349_v26 }
  0x9d   : > { %v4144_v59 = vld [vmem:[#allocation7 + $0x344] ss:$16 sps:$4 sm:$0xff]   ;;  %v4147_v61 = vld [vmem:[#allocation7 + $0x340] ss:$16 sps:$4 sm:$0xff]  }
  0x9e   : > { %2031 = vmatpush1.bf16.msra.mxu0 %v4110_v30  ;;  %v4148_v62 = vld [vmem:[#allocation7 + $0x124] ss:$16 sps:$4 sm:$0xff]   ;;  %v4152_v0 = vld [vmem:[#allocation7 + $0x120] ss:$16 sps:$4 sm:$0xff]  }
  0x9f   : > { %2094 = vmatpush1.bf16.msra.mxu1 %v4111_v31  ;;  %2032 = vmatprep.subr.bf16.mxu0 %v4112_v32  ;;  %v4150_v63 = vld [vmem:[#allocation7 + $0x324] ss:$16 sps:$4 sm:$0xff]   ;;  %v4153_v1 = vld [vmem:[#allocation7 + $0x320] ss:$16 sps:$4 sm:$0xff]   ;;  %v5038_v31 = vcombine.low %v345_v25, %v349_v26 }
  0xa0   : > { %2095 = vmatprep.subr.bf16.mxu1 %v4114_v33  ;;  %v4154_v2 = vld [vmem:[#allocation7 + $0x104] ss:$16 sps:$4 sm:$0xff]   ;;  %v4158_v4 = vld [vmem:[#allocation7 + $0x100] ss:$16 sps:$4 sm:$0xff]  }
  0xa1   : > { %v4156_v3 = vld [vmem:[#allocation7 + $0x304] ss:$16 sps:$4 sm:$0xff]   ;;  %v4159_v5 = vld [vmem:[#allocation7 + $0x300] ss:$16 sps:$4 sm:$0xff]  }
  0xa2   : > { %2033 = vmatpush2.bf16.msra.mxu0 %v4116_v34  ;;  %v4162_v6 = vld [vmem:[#allocation7 + $0x4e4] ss:$16 sps:$4 sm:$0xff]   ;;  %v4160_v10 = vld [vmem:[#allocation7 + $0x4e0] ss:$16 sps:$4 sm:$0xff]  }
  0xa3   : > { %2096 = vmatpush2.bf16.msra.mxu1 %v4117_v35  ;;  %2034 = vmatprep.subr.bf16.mxu0 %v4118_v36  ;;  %v4165_v7 = vld [vmem:[#allocation7 + $0x6e4] ss:$16 sps:$4 sm:$0xff]   ;;  %v4163_v11 = vld [vmem:[#allocation7 + $0x6e0] ss:$16 sps:$4 sm:$0xff]  }
  0xa4   : > { %2097 = vmatprep.subr.bf16.mxu1 %v4120_v37  ;;  %v4168_v12 = vld [vmem:[#allocation7 + $0x4c4] ss:$16 sps:$4 sm:$0xff]   ;;  %v4166_v14 = vld [vmem:[#allocation7 + $0x4c0] ss:$16 sps:$4 sm:$0xff]  }
  0xa5   : > { %v4171_v13 = vld [vmem:[#allocation7 + $0x6c4] ss:$16 sps:$4 sm:$0xff]   ;;  %v4169_v15 = vld [vmem:[#allocation7 + $0x6c0] ss:$16 sps:$4 sm:$0xff]  }
  0xa6   : > { %2035 = vmatpush2.bf16.msra.mxu0 %v4122_v38  ;;  %v4174_v16 = vld [vmem:[#allocation7 + $0x4a4] ss:$16 sps:$4 sm:$0xff]   ;;  %v4172_v18 = vld [vmem:[#allocation7 + $0x4a0] ss:$16 sps:$4 sm:$0xff]  }
  0xa7   : > { %2098 = vmatpush2.bf16.msra.mxu1 %v4123_v39  ;;  %2036 = vmatprep.subr.bf16.mxu0 %v4124_v40  ;;  %v4177_v17 = vld [vmem:[#allocation7 + $0x6a4] ss:$16 sps:$4 sm:$0xff]   ;;  %v4175_v19 = vld [vmem:[#allocation7 + $0x6a0] ss:$16 sps:$4 sm:$0xff]   ;;  %v353_v40 = vld [vmem:[%s4990_s12 + $0x88] sm:$0xff] }
  0xa8   : > { %2099 = vmatprep.subr.bf16.mxu1 %v4126_v41  ;;  %v4180_v20 = vld [vmem:[#allocation7 + $0x484] ss:$16 sps:$4 sm:$0xff]   ;;  %v4178_v27 = vld [vmem:[#allocation7 + $0x480] ss:$16 sps:$4 sm:$0xff]  }
  0xa9   : > { %v4183_v21 = vld [vmem:[#allocation7 + $0x684] ss:$16 sps:$4 sm:$0xff]   ;;  %v4181_v28 = vld [vmem:[#allocation7 + $0x680] ss:$16 sps:$4 sm:$0xff]  }
  0xaa   : > { %2037 = vmatpush2.bf16.msra.mxu0 %v4128_v42  ;;  %v344_v22 = vld [vmem:[%s4990_s12 + $0x40] sm:$0xff]  ;;  %v357_v42 = vld [vmem:[%s4990_s12 + $0xa8] sm:$0xff] }
  0xab   : > { %2100 = vmatpush2.bf16.msra.mxu1 %v4129_v43  ;;  %2038 = vmatprep.subr.bf16.mxu0 %v4130_v44  ;;  %v348_v23 = vld [vmem:[%s4990_s12 + $0x60] sm:$0xff]  ;;  %v5050_v43 = vcombine.high %v353_v40, %v357_v42 }
  0xac   : > { %2101 = vmatprep.subr.bf16.mxu1 %v4132_v45  ;;  %v5030_v24 = vcombine.high %v344_v22, %v348_v23  ;;  %v5036_v30 = vcombine.low %v344_v22, %v348_v23  ;;  %v4186_v32 = vld [vmem:[#allocation7 + $0x464] ss:$16 sps:$4 sm:$0xff]   ;;  %v4184_v34 = vld [vmem:[#allocation7 + $0x460] ss:$16 sps:$4 sm:$0xff]  }
  0xad   : > { %v4189_v33 = vld [vmem:[#allocation7 + $0x664] ss:$16 sps:$4 sm:$0xff]   ;;  %v4187_v35 = vld [vmem:[#allocation7 + $0x660] ss:$16 sps:$4 sm:$0xff]  }
  0xae   : > { %2039 = vmatpush2.bf16.msra.mxu0 %v4134_v46  ;;  %v4192_v36 = vld [vmem:[#allocation7 + $0x444] ss:$16 sps:$4 sm:$0xff]   ;;  %v4190_v44 = vld [vmem:[#allocation7 + $0x440] ss:$16 sps:$4 sm:$0xff]  }
  0xaf   : > { %2102 = vmatpush2.bf16.msra.mxu1 %v4135_v47  ;;  %2040 = vmatprep.subr.bf16.mxu0 %v4136_v52  ;;  %v4195_v37 = vld [vmem:[#allocation7 + $0x644] ss:$16 sps:$4 sm:$0xff]   ;;  %v4193_v45 = vld [vmem:[#allocation7 + $0x640] ss:$16 sps:$4 sm:$0xff]   ;;  %v5055_v47 = vcombine.low %v353_v40, %v357_v42  ;;  %v4256_v40 = vld [vmem:[#allocation7 + $0xe8] ss:$16 sps:$4 sm:$0xff]  }
  0xb0   : > { %2103 = vmatprep.subr.bf16.mxu1 %v4138_v54  ;;  %v352_v38 = vld [vmem:[%s4990_s12 + $0x80] sm:$0xff]  ;;  %v4259_v42 = vld [vmem:[#allocation7 + $0x2e8] ss:$16 sps:$4 sm:$0xff]  }
  0xb1   : > { %v356_v39 = vld [vmem:[%s4990_s12 + $0xa0] sm:$0xff] }
  0xb2   : > { %2041 = vmatpush2.bf16.msra.mxu0 %v4140_v56  ;;  %v5047_v41 = vcombine.high %v352_v38, %v356_v39  ;;  %v5053_v46 = vcombine.low %v352_v38, %v356_v39  ;;  %v4198_v48 = vld [vmem:[#allocation7 + $0x424] ss:$16 sps:$4 sm:$0xff]   ;;  %v4196_v50 = vld [vmem:[#allocation7 + $0x420] ss:$16 sps:$4 sm:$0xff]   ;;  %v4258_v38 = vld [vmem:[#allocation7 + $0xec] ss:$16 sps:$4 sm:$0xff]  }
  0xb3   : > { %2104 = vmatpush2.bf16.msra.mxu1 %v4141_v57  ;;  %2042 = vmatprep.subr.bf16.mxu0 %v4142_v58  ;;  %v4201_v49 = vld [vmem:[#allocation7 + $0x624] ss:$16 sps:$4 sm:$0xff]   ;;  %v4199_v51 = vld [vmem:[#allocation7 + $0x620] ss:$16 sps:$4 sm:$0xff]   ;;  %v4261_v39 = vld [vmem:[#allocation7 + $0x2ec] ss:$16 sps:$4 sm:$0xff]  }
  0xb4   : > { %2105 = vmatprep.subr.bf16.mxu1 %v4144_v59  ;;  %v4204_v52 = vld [vmem:[#allocation7 + $0x404] ss:$16 sps:$4 sm:$0xff]   ;;  %v5071_v59 = vld [vmem:[%s4990_s12 + $0x18] sm:$0xff]  ;;  %v4238_v25 = vld [vmem:[#allocation7 + $0x540] ss:$16 sps:$4 sm:$0xff]  }
  0xb5   : > { %v4207_v54 = vld [vmem:[#allocation7 + $0x604] ss:$16 sps:$4 sm:$0xff]   ;;  %v4241_v26 = vld [vmem:[#allocation7 + $0x740] ss:$16 sps:$4 sm:$0xff]  }
  0xb6   : > { %2043 = vmatpush2.bf16.msra.mxu0 %v4146_v60  ;;  %v5061_v56 = vld [vmem:[%s4990_s12 + $0x10] sm:$0xff]  ;;  %v5074_v60 = vld [vmem:[%s4990_s12 + $0x38] sm:$0xff] }
  0xb7   : > { %2106 = vmatpush2.bf16.msra.mxu1 %v4147_v61  ;;  %2044 = vmatprep.subr.bf16.mxu0 %v4148_v62  ;;  %v5064_v57 = vld [vmem:[%s4990_s12 + $0x30] sm:$0xff] }
  0xb8   : > { %2107 = vmatprep.subr.bf16.mxu1 %v4150_v63  ;;  %v5068_v58 = vcombine.high %v5061_v56, %v5064_v57  ;;  %v4202_v61 = vld [vmem:[#allocation7 + $0x400] ss:$16 sps:$4 sm:$0xff]   ;;  %v5078_v63 = vcombine.high %v5071_v59, %v5074_v60  ;;  %v4240_v22 = vld [vmem:[#allocation7 + $0x544] ss:$16 sps:$4 sm:$0xff]  }
  0xb9   : > { %v4205_v62 = vld [vmem:[#allocation7 + $0x600] ss:$16 sps:$4 sm:$0xff]   ;;  %v4243_v23 = vld [vmem:[#allocation7 + $0x744] ss:$16 sps:$4 sm:$0xff]  }
  0xba   : > { %2045 = vmatpush2.bf16.msra.mxu0 %v4152_v0  ;;  %v4210_v0 = vld [vmem:[#allocation7 + $0x5e4] ss:$16 sps:$4 sm:$0xff]  }
  0xbb   : > { %2108 = vmatpush2.bf16.msra.mxu1 %v4153_v1  ;;  %2046 = vmatprep.subr.bf16.mxu0 %v4154_v2  ;;  %v4213_v1 = vld [vmem:[#allocation7 + $0x7e4] ss:$16 sps:$4 sm:$0xff]   ;;  %v4208_v2 = vld [vmem:[#allocation7 + $0x5e0] ss:$16 sps:$4 sm:$0xff]  }
  0xbc   : > { %2109 = vmatprep.subr.bf16.mxu1 %v4156_v3  ;;  %v4211_v3 = vld [vmem:[#allocation7 + $0x7e0] ss:$16 sps:$4 sm:$0xff]  }
  0xbe   : > { %2047 = vmatpush2.bf16.msra.mxu0 %v4158_v4  ;;  %v4216_v4 = vld [vmem:[#allocation7 + $0x5c4] ss:$16 sps:$4 sm:$0xff]  }
  0xbf   : > { %2110 = vmatpush2.bf16.msra.mxu1 %v4159_v5  ;;  %2142 = vmatprep.subr.bf16.mxu0 %v4162_v6  ;;  %v4219_v5 = vld [vmem:[#allocation7 + $0x7c4] ss:$16 sps:$4 sm:$0xff]   ;;  %v4214_v6 = vld [vmem:[#allocation7 + $0x5c0] ss:$16 sps:$4 sm:$0xff]  }
  0xc0   : > { %2205 = vmatprep.subr.bf16.mxu1 %v4165_v7  ;;  %v4217_v7 = vld [vmem:[#allocation7 + $0x7c0] ss:$16 sps:$4 sm:$0xff]  }
  0xc1   : > { %2049 = vmatmul.mubr.bf16.vlgmr.msra.gmra.mxu0 %v5022_v8 }
  0xc2   : > { %2112 = vmatmul.mubr.bf16.vlgmr.msra.gmra.mxu1 %v5024_v9  ;;  %2143 = vmatpush1.bf16.msra.mxu0 %v4160_v10  ;;  %v4222_v10 = vld [vmem:[#allocation7 + $0x5a4] ss:$16 sps:$4 sm:$0xff]  }
  0xc3   : > { %2206 = vmatpush1.bf16.msra.mxu1 %v4163_v11  ;;  %2144 = vmatprep.subr.bf16.mxu0 %v4168_v12  ;;  %v4225_v11 = vld [vmem:[#allocation7 + $0x7a4] ss:$16 sps:$4 sm:$0xff]   ;;  %v4220_v12 = vld [vmem:[#allocation7 + $0x5a0] ss:$16 sps:$4 sm:$0xff]  }
  0xc4   : > { %2207 = vmatprep.subr.bf16.mxu1 %v4171_v13  ;;  %2058 = vmatprep.mubr.bf16.mxu0 %v5030_v24  ;;  %v4223_v13 = vld [vmem:[#allocation7 + $0x7a0] ss:$16 sps:$4 sm:$0xff]  }
  0xc5   : > { %2121 = vmatprep.mubr.bf16.mxu1 %v5034_v29 }
  0xc6   : > { %2145 = vmatpush1.bf16.msra.mxu0 %v4166_v14  ;;  %v4228_v14 = vld [vmem:[#allocation7 + $0x584] ss:$16 sps:$4 sm:$0xff]  }
  0xc7   : > { %2208 = vmatpush1.bf16.msra.mxu1 %v4169_v15  ;;  %2146 = vmatprep.subr.bf16.mxu0 %v4174_v16  ;;  %v4231_v15 = vld [vmem:[#allocation7 + $0x784] ss:$16 sps:$4 sm:$0xff]   ;;  %v4226_v16 = vld [vmem:[#allocation7 + $0x580] ss:$16 sps:$4 sm:$0xff]  }
  0xc8   : > { %2209 = vmatprep.subr.bf16.mxu1 %v4177_v17  ;;  %v4229_v17 = vld [vmem:[#allocation7 + $0x780] ss:$16 sps:$4 sm:$0xff]  }
  0xc9   : > { %2059 = vmatmul.mubr.bf16.gmra.mxu0 %v5036_v30 }
  0xca   : > { %2147 = vmatpush1.bf16.msra.mxu0 %v4172_v18  ;;  %2122 = vmatmul.mubr.bf16.gmra.mxu1 %v5038_v31  ;;  %v4234_v18 = vld [vmem:[#allocation7 + $0x564] ss:$16 sps:$4 sm:$0xff]  }
  0xcb   : > { %2210 = vmatpush1.bf16.msra.mxu1 %v4175_v19  ;;  %2148 = vmatprep.subr.bf16.mxu0 %v4180_v20  ;;  %v4237_v19 = vld [vmem:[#allocation7 + $0x764] ss:$16 sps:$4 sm:$0xff]   ;;  %v4232_v20 = vld [vmem:[#allocation7 + $0x560] ss:$16 sps:$4 sm:$0xff]  }
  0xcc   : > { %2211 = vmatprep.subr.bf16.mxu1 %v4183_v21  ;;  %2068 = vmatprep.mubr.bf16.mxu0 %v5047_v41  ;;  %v4235_v21 = vld [vmem:[#allocation7 + $0x760] ss:$16 sps:$4 sm:$0xff]  }
  0xcd   : > { %2131 = vmatprep.mubr.bf16.mxu1 %v5050_v43 }
  0xce   : > { %2149 = vmatpush1.bf16.msra.mxu0 %v4178_v27  ;;  %v4246_v27 = vld [vmem:[#allocation7 + $0x524] ss:$16 sps:$4 sm:$0xff]  }
  0xcf   : > { %2212 = vmatpush1.bf16.msra.mxu1 %v4181_v28  ;;  %2150 = vmatprep.subr.bf16.mxu0 %v4186_v32  ;;  %v4249_v28 = vld [vmem:[#allocation7 + $0x724] ss:$16 sps:$4 sm:$0xff]   ;;  %v4244_v32 = vld [vmem:[#allocation7 + $0x520] ss:$16 sps:$4 sm:$0xff]  }
  0xd0   : > { %2213 = vmatprep.subr.bf16.mxu1 %v4189_v33  ;;  %v4247_v33 = vld [vmem:[#allocation7 + $0x720] ss:$16 sps:$4 sm:$0xff]  }
  0xd1   : > { %2069 = vmatmul.mubr.bf16.gmra.mxu0 %v5053_v46 }
  0xd2   : > { %2151 = vmatpush1.bf16.msra.mxu0 %v4184_v34  ;;  %2132 = vmatmul.mubr.bf16.gmra.mxu1 %v5055_v47  ;;  %v4252_v34 = vld [vmem:[#allocation7 + $0x504] ss:$16 sps:$4 sm:$0xff]  }
  0xd3   : > { %2214 = vmatpush1.bf16.msra.mxu1 %v4187_v35  ;;  %2152 = vmatprep.subr.bf16.mxu0 %v4192_v36  ;;  %v4255_v35 = vld [vmem:[#allocation7 + $0x704] ss:$16 sps:$4 sm:$0xff]   ;;  %v4250_v36 = vld [vmem:[#allocation7 + $0x500] ss:$16 sps:$4 sm:$0xff]  }
  0xd4   : > { %2215 = vmatprep.subr.bf16.mxu1 %v4195_v37  ;;  %2174 = vmatprep.mubr.bf16.mxu0 %v5068_v58  ;;  %v4253_v37 = vld [vmem:[#allocation7 + $0x700] ss:$16 sps:$4 sm:$0xff]  }
  0xd5   : > { %2237 = vmatprep.mubr.bf16.mxu1 %v5078_v63 }
  0xd6   : > { %2153 = vmatpush1.bf16.msra.mxu0 %v4190_v44  ;;  %v346_v44 = vld [vmem:[%s4990_s12 + $0x50] sm:$0xff] }
  0xd7   : > { %2216 = vmatpush1.bf16.msra.mxu1 %v4193_v45  ;;  %2154 = vmatprep.subr.bf16.mxu0 %v4198_v48  ;;  %v350_v45 = vld [vmem:[%s4990_s12 + $0x70] sm:$0xff]  ;;  %v5086_v48 = vcombine.low %v5061_v56, %v5064_v57  ;;  %v4262_v56 = vld [vmem:[#allocation7 + $0xc8] ss:$16 sps:$4 sm:$0xff]  }
  0xd8   : > { %2217 = vmatprep.subr.bf16.mxu1 %v4201_v49  ;;  %v5090_v49 = vcombine.low %v5071_v59, %v5074_v60  ;;  %v4265_v57 = vld [vmem:[#allocation7 + $0x2c8] ss:$16 sps:$4 sm:$0xff]   ;;  %v4270_v59 = vld [vmem:[#allocation7 + $0xac] ss:$16 sps:$4 sm:$0xff]  }
  0xd9   : > { %v4273_v60 = vld [vmem:[#allocation7 + $0x2ac] ss:$16 sps:$4 sm:$0xff]  }
  0xda   : > { %2155 = vmatpush1.bf16.msra.mxu0 %v4196_v50  ;;  %v347_v50 = vld [vmem:[%s4990_s12 + $0x58] sm:$0xff] }
  0xdb   : > { %2218 = vmatpush1.bf16.msra.mxu1 %v4199_v51  ;;  %2156 = vmatprep.subr.bf16.mxu0 %v4204_v52  ;;  %v351_v51 = vld [vmem:[%s4990_s12 + $0x78] sm:$0xff] }
  0xdc   : > { %2219 = vmatprep.subr.bf16.mxu1 %v4207_v54  ;;  %v4264_v52 = vld [vmem:[#allocation7 + $0xcc] ss:$16 sps:$4 sm:$0xff]  }
  0xdd   : > { %v4267_v54 = vld [vmem:[#allocation7 + $0x2cc] ss:$16 sps:$4 sm:$0xff]  }
  0xde   : > { %2157 = vmatpush1.bf16.msra.mxu0 %v4202_v61  ;;  %v5094_v61 = vcombine.high %v346_v44, %v350_v45 }
  0xdf   : > { %2220 = vmatpush1.bf16.msra.mxu1 %v4205_v62  ;;  %2158 = vmatprep.subr.bf16.mxu0 %v4210_v0  ;;  %v5096_v62 = vcombine.high %v347_v50, %v351_v51  ;;  %v4268_v0 = vld [vmem:[#allocation7 + $0xa8] ss:$16 sps:$4 sm:$0xff]  }
  0xe0   : > { %2221 = vmatprep.subr.bf16.mxu1 %v4213_v1  ;;  %v4271_v1 = vld [vmem:[#allocation7 + $0x2a8] ss:$16 sps:$4 sm:$0xff]  }
  0xe2   : > { %2159 = vmatpush2.bf16.msra.mxu0 %v4208_v2  ;;  %v354_v2 = vld [vmem:[%s4990_s12 + $0x90] sm:$0xff] }
  0xe3   : > { %2222 = vmatpush2.bf16.msra.mxu1 %v4211_v3  ;;  %2160 = vmatprep.subr.bf16.mxu0 %v4216_v4  ;;  %v358_v3 = vld [vmem:[%s4990_s12 + $0xb0] sm:$0xff]  ;;  %v5104_v4 = vcombine.low %v346_v44, %v350_v45  ;;  %v4310_v44 = vld [vmem:[#allocation7 + $0x1c8] ss:$16 sps:$4 sm:$0xff]  }
  0xe4   : > { %2223 = vmatprep.subr.bf16.mxu1 %v4219_v5  ;;  %v5106_v5 = vcombine.low %v347_v50, %v351_v51  ;;  %v4313_v45 = vld [vmem:[#allocation7 + $0x3c8] ss:$16 sps:$4 sm:$0xff]   ;;  %v4318_v50 = vld [vmem:[#allocation7 + $0x1ac] ss:$16 sps:$4 sm:$0xff]  }
  0xe5   : > { %v4321_v51 = vld [vmem:[#allocation7 + $0x3ac] ss:$16 sps:$4 sm:$0xff]  }
  0xe6   : > { %2161 = vmatpush2.bf16.msra.mxu0 %v4214_v6  ;;  %v355_v6 = vld [vmem:[%s4990_s12 + $0x98] sm:$0xff] }
  0xe7   : > { %2224 = vmatpush2.bf16.msra.mxu1 %v4217_v7  ;;  %2162 = vmatprep.subr.bf16.mxu0 %v4222_v10  ;;  %v359_v7 = vld [vmem:[%s4990_s12 + $0xb8] sm:$0xff]  ;;  %s4700_s12 = sshll.u32 %s4787_s10, 4  ;;  %s4701_s12 = int_to_ptr.vmem [resolvable:$false] %s4700_s12 }
  0xe8   : > { %2225 = vmatprep.subr.bf16.mxu1 %v4225_v11  ;;  %v4276_v10 = vld [vmem:[#allocation7 + $0x8c] ss:$16 sps:$4 sm:$0xff]   ;;  %s4702_s3 = scalar_lea.vmem %s4701_s12, 1024  ;;  %p4703_p3 = scmp.lt.s32.totalorder %s5430_s30, %s4701_s12 }
  0xe9   : > { %v4279_v11 = vld [vmem:[#allocation7 + $0x28c] ss:$16 sps:$4 sm:$0xff]   ;;  %p4704_p1 = scmp.lt.s32.totalorder %s4702_s3, %s4696_s17 }
  0xea   : > { %2163 = vmatpush2.bf16.msra.mxu0 %v4220_v12  ;;  %v5110_v12 = vcombine.high %v354_v2, %v358_v3 }
  0xeb   : > { %2226 = vmatpush2.bf16.msra.mxu1 %v4223_v13  ;;  %2164 = vmatprep.subr.bf16.mxu0 %v4228_v14  ;;  %v5112_v13 = vcombine.high %v355_v6, %v359_v7  ;;  %v4274_v14 = vld [vmem:[#allocation7 + $0x88] ss:$16 sps:$4 sm:$0xff]   ;;  %p4705_p4 = por %p4704_p1, %p4703_p3 }
  0xec   : > { %2227 = vmatprep.subr.bf16.mxu1 %v4231_v15  ;;  %v4277_v15 = vld [vmem:[#allocation7 + $0x288] ss:$16 sps:$4 sm:$0xff]  }
  0xed   : > { %p4706_p7 = pnand %p4705_p4, %p4699_p12 }
  0xee   : > { %2165 = vmatpush2.bf16.msra.mxu0 %v4226_v16  ;;  %v4282_v16 = vld [vmem:[#allocation7 + $0x6c] ss:$16 sps:$4 sm:$0xff]  }
  0xef   : > { %2228 = vmatpush2.bf16.msra.mxu1 %v4229_v17  ;;  %2166 = vmatprep.subr.bf16.mxu0 %v4234_v18  ;;  %v4285_v17 = vld [vmem:[#allocation7 + $0x26c] ss:$16 sps:$4 sm:$0xff]   ;;  %v5118_v18 = vcombine.low %v354_v2, %v358_v3  ;;  %v4328_v2 = vld [vmem:[#allocation7 + $0x168] ss:$16 sps:$4 sm:$0xff]  }
  0xf0   : > { %2229 = vmatprep.subr.bf16.mxu1 %v4237_v19  ;;  %v4280_v19 = vld [vmem:[#allocation7 + $0x68] ss:$16 sps:$4 sm:$0xff]  }
  0xf1   : > { %v4331_v3 = vld [vmem:[#allocation7 + $0x368] ss:$16 sps:$4 sm:$0xff]  }
  0xf2   : > { %2167 = vmatpush2.bf16.msra.mxu0 %v4232_v20  ;;  %v4283_v20 = vld [vmem:[#allocation7 + $0x268] ss:$16 sps:$4 sm:$0xff]  }
  0xf3   : > { %2230 = vmatpush2.bf16.msra.mxu1 %v4235_v21  ;;  %2168 = vmatprep.subr.bf16.mxu0 %v4240_v22  ;;  %v5120_v21 = vcombine.low %v355_v6, %v359_v7  ;;  %v4288_v22 = vld [vmem:[#allocation7 + $0x4c] ss:$16 sps:$4 sm:$0xff]  }
  0xf4   : > { %2231 = vmatprep.subr.bf16.mxu1 %v4243_v23  ;;  %v4291_v23 = vld [vmem:[#allocation7 + $0x24c] ss:$16 sps:$4 sm:$0xff]  }
  0xf5   : > { %v4336_v6 = vld [vmem:[#allocation7 + $0x14c] ss:$16 sps:$4 sm:$0xff]  }
  0xf6   : > { %2169 = vmatpush2.bf16.msra.mxu0 %v4238_v25  ;;  %v4286_v25 = vld [vmem:[#allocation7 + $0x48] ss:$16 sps:$4 sm:$0xff]   ;;  %v4339_v7 = vld [vmem:[#allocation7 + $0x34c] ss:$16 sps:$4 sm:$0xff]  }
  0xf7   : > { %2232 = vmatpush2.bf16.msra.mxu1 %v4241_v26  ;;  %2170 = vmatprep.subr.bf16.mxu0 %v4246_v27  ;;  %v4289_v26 = vld [vmem:[#allocation7 + $0x248] ss:$16 sps:$4 sm:$0xff]   ;;  %v4294_v27 = vld [vmem:[#allocation7 + $0x2c] ss:$16 sps:$4 sm:$0xff]  }
  0xf8   : > { %2233 = vmatprep.subr.bf16.mxu1 %v4249_v28  ;;  %v4297_v28 = vld [vmem:[#allocation7 + $0x22c] ss:$16 sps:$4 sm:$0xff]  }
  0xfa   : > { %2171 = vmatpush2.bf16.msra.mxu0 %v4244_v32  ;;  %v4292_v32 = vld [vmem:[#allocation7 + $0x28] ss:$16 sps:$4 sm:$0xff]  }
  0xfb   : > { %2234 = vmatpush2.bf16.msra.mxu1 %v4247_v33  ;;  %2172 = vmatprep.subr.bf16.mxu0 %v4252_v34  ;;  %v4295_v33 = vld [vmem:[#allocation7 + $0x228] ss:$16 sps:$4 sm:$0xff]   ;;  %v4300_v34 = vld [vmem:[#allocation7 + $0xc] ss:$16 sps:$4 sm:$0xff]  }
  0xfc   : > { %2235 = vmatprep.subr.bf16.mxu1 %v4255_v35  ;;  %v4303_v35 = vld [vmem:[#allocation7 + $0x20c] ss:$16 sps:$4 sm:$0xff]  }
  0xfe   : > { %2173 = vmatpush2.bf16.msra.mxu0 %v4250_v36  ;;  %v4298_v36 = vld [vmem:[#allocation7 + $0x8] ss:$16 sps:$4 sm:$0xff]  }
  0xff   : > { %2236 = vmatpush2.bf16.msra.mxu1 %v4253_v37  ;;  %2268 = vmatprep.subr.bf16.mxu0 %v4258_v38  ;;  %v4301_v37 = vld [vmem:[#allocation7 + $0x208] ss:$16 sps:$4 sm:$0xff]   ;;  %v4306_v38 = vld [vmem:[#allocation7 + $0x1ec] ss:$16 sps:$4 sm:$0xff]  }
 0x100   : > { %2331 = vmatprep.subr.bf16.mxu1 %v4261_v39  ;;  %v4309_v39 = vld [vmem:[#allocation7 + $0x3ec] ss:$16 sps:$4 sm:$0xff]  }
 0x101   : > { %2175 = vmatmul.mubr.bf16.vlgmr.msra.gmra.mxu0 %v5086_v48 }
 0x102   : > { %2238 = vmatmul.mubr.bf16.vlgmr.msra.gmra.mxu1 %v5090_v49  ;;  %2269 = vmatpush1.bf16.msra.mxu0 %v4256_v40  ;;  %v4304_v40 = vld [vmem:[#allocation7 + $0x1e8] ss:$16 sps:$4 sm:$0xff]  }
 0x103   : > { %2332 = vmatpush1.bf16.msra.mxu1 %v4259_v42  ;;  %2270 = vmatprep.subr.bf16.mxu0 %v4264_v52  ;;  %v4315_v42 = vld [vmem:[#allocation7 + $0x3cc] ss:$16 sps:$4 sm:$0xff]   ;;  %v4316_v52 = vld [vmem:[#allocation7 + $0x1a8] ss:$16 sps:$4 sm:$0xff]  }
 0x104   : > { %2333 = vmatprep.subr.bf16.mxu1 %v4267_v54  ;;  %2184 = vmatprep.mubr.bf16.mxu0 %v5094_v61  ;;  %v4319_v54 = vld [vmem:[#allocation7 + $0x3a8] ss:$16 sps:$4 sm:$0xff]  }
 0x105   : > { %2247 = vmatprep.mubr.bf16.mxu1 %v5096_v62 }
 0x106   : > { %2271 = vmatpush1.bf16.msra.mxu0 %v4262_v56  ;;  %v4324_v56 = vld [vmem:[#allocation7 + $0x18c] ss:$16 sps:$4 sm:$0xff]  }
 0x107   : > { %2334 = vmatpush1.bf16.msra.mxu1 %v4265_v57  ;;  %2272 = vmatprep.subr.bf16.mxu0 %v4270_v59  ;;  %v4327_v57 = vld [vmem:[#allocation7 + $0x38c] ss:$16 sps:$4 sm:$0xff]   ;;  %v4322_v59 = vld [vmem:[#allocation7 + $0x188] ss:$16 sps:$4 sm:$0xff]  }
 0x108   : > { %2335 = vmatprep.subr.bf16.mxu1 %v4273_v60  ;;  %v4325_v60 = vld [vmem:[#allocation7 + $0x388] ss:$16 sps:$4 sm:$0xff]  }
 0x109   : > { %2185 = vmatmul.mubr.bf16.gmra.mxu0 %v5104_v4 }
 0x10a   : > { %2248 = vmatmul.mubr.bf16.gmra.mxu1 %v5106_v5  ;;  %2273 = vmatpush1.bf16.msra.mxu0 %v4268_v0  ;;  %v4330_v0 = vld [vmem:[#allocation7 + $0x16c] ss:$16 sps:$4 sm:$0xff]  }
 0x10b   : > { %2336 = vmatpush1.bf16.msra.mxu1 %v4271_v1  ;;  %2274 = vmatprep.subr.bf16.mxu0 %v4276_v10  ;;  %v4333_v1 = vld [vmem:[#allocation7 + $0x36c] ss:$16 sps:$4 sm:$0xff]   ;;  %v4334_v10 = vld [vmem:[#allocation7 + $0x148] ss:$16 sps:$4 sm:$0xff]  }
 0x10c   : > { %2337 = vmatprep.subr.bf16.mxu1 %v4279_v11  ;;  %2194 = vmatprep.mubr.bf16.mxu0 %v5110_v12  ;;  %v4337_v11 = vld [vmem:[#allocation7 + $0x348] ss:$16 sps:$4 sm:$0xff]  }
 0x10d   : > { %2257 = vmatprep.mubr.bf16.mxu1 %v5112_v13 }
 0x10e   : > { %2275 = vmatpush1.bf16.msra.mxu0 %v4274_v14  ;;  %v4342_v14 = vld [vmem:[#allocation7 + $0x12c] ss:$16 sps:$4 sm:$0xff]  }
 0x10f   : > { %2338 = vmatpush1.bf16.msra.mxu1 %v4277_v15  ;;  %2276 = vmatprep.subr.bf16.mxu0 %v4282_v16  ;;  %v4345_v15 = vld [vmem:[#allocation7 + $0x32c] ss:$16 sps:$4 sm:$0xff]   ;;  %v4340_v16 = vld [vmem:[#allocation7 + $0x128] ss:$16 sps:$4 sm:$0xff]  }
 0x110   : > { %2339 = vmatprep.subr.bf16.mxu1 %v4285_v17  ;;  %v4343_v17 = vld [vmem:[#allocation7 + $0x328] ss:$16 sps:$4 sm:$0xff]  }
 0x111   : > { %2195 = vmatmul.mubr.bf16.gmra.mxu0 %v5118_v18 }
 0x112   : > { %2258 = vmatmul.mubr.bf16.gmra.mxu1 %v5120_v21  ;;  %2277 = vmatpush1.bf16.msra.mxu0 %v4280_v19  ;;  %v4348_v19 = vld [vmem:[#allocation7 + $0x10c] ss:$16 sps:$4 sm:$0xff]  }
 0x113   : > { %2340 = vmatpush1.bf16.msra.mxu1 %v4283_v20  ;;  %2278 = vmatprep.subr.bf16.mxu0 %v4288_v22  ;;  %v4351_v20 = vld [vmem:[#allocation7 + $0x30c] ss:$16 sps:$4 sm:$0xff]   ;;  %v4346_v22 = vld [vmem:[#allocation7 + $0x108] ss:$16 sps:$4 sm:$0xff]  }
 0x114   : > { %2341 = vmatprep.subr.bf16.mxu1 %v4291_v23  ;;  %2300 = vmatprep.mubr.bf16.mxu0 %v5016_v53  ;;  %v4307_v53 = vld [vmem:[#allocation7 + $0x3e8] ss:$16 sps:$4 sm:$0xff]  }
 0x115   : > { %2363 = vmatprep.mubr.bf16.mxu1 %v5018_v55  ;;  %v4312_v55 = vld [vmem:[#allocation7 + $0x1cc] ss:$16 sps:$4 sm:$0xff]   ;;  %v4349_v23 = vld [vmem:[#allocation7 + $0x308] ss:$16 sps:$4 sm:$0xff]  }
 0x116   : > { %2279 = vmatpush1.bf16.msra.mxu0 %v4286_v25  ;;  %v4354_v25 = vld [vmem:[#allocation7 + $0x4ec] ss:$16 sps:$4 sm:$0xff]  }
 0x117   : > { %2342 = vmatpush1.bf16.msra.mxu1 %v4289_v26  ;;  %2280 = vmatprep.subr.bf16.mxu0 %v4294_v27  ;;  %v4357_v26 = vld [vmem:[#allocation7 + $0x6ec] ss:$16 sps:$4 sm:$0xff]   ;;  %v4352_v27 = vld [vmem:[#allocation7 + $0x4e8] ss:$16 sps:$4 sm:$0xff]  }
 0x118   : > { %2343 = vmatprep.subr.bf16.mxu1 %v4297_v28  ;;  %v4355_v28 = vld [vmem:[#allocation7 + $0x6e8] ss:$16 sps:$4 sm:$0xff]  }
 0x11a   : > { %2281 = vmatpush1.bf16.msra.mxu0 %v4292_v32  ;;  %v4360_v32 = vld [vmem:[#allocation7 + $0x4cc] ss:$16 sps:$4 sm:$0xff]  }
 0x11b   : > { %2344 = vmatpush1.bf16.msra.mxu1 %v4295_v33  ;;  %2282 = vmatprep.subr.bf16.mxu0 %v4300_v34  ;;  %v4363_v33 = vld [vmem:[#allocation7 + $0x6cc] ss:$16 sps:$4 sm:$0xff]   ;;  %v4358_v34 = vld [vmem:[#allocation7 + $0x4c8] ss:$16 sps:$4 sm:$0xff]  }
 0x11c   : > { %2345 = vmatprep.subr.bf16.mxu1 %v4303_v35  ;;  %v4361_v35 = vld [vmem:[#allocation7 + $0x6c8] ss:$16 sps:$4 sm:$0xff]  }
 0x11e   : > { %2283 = vmatpush1.bf16.msra.mxu0 %v4298_v36  ;;  %v4366_v36 = vld [vmem:[#allocation7 + $0x4ac] ss:$16 sps:$4 sm:$0xff]  }
 0x11f   : > { %2346 = vmatpush1.bf16.msra.mxu1 %v4301_v37  ;;  %2284 = vmatprep.subr.bf16.mxu0 %v4306_v38  ;;  %v4369_v37 = vld [vmem:[#allocation7 + $0x6ac] ss:$16 sps:$4 sm:$0xff]   ;;  %v4364_v38 = vld [vmem:[#allocation7 + $0x4a8] ss:$16 sps:$4 sm:$0xff]  }
 0x120   : > { %2347 = vmatprep.subr.bf16.mxu1 %v4309_v39  ;;  %v4367_v39 = vld [vmem:[#allocation7 + $0x6a8] ss:$16 sps:$4 sm:$0xff]  }
 0x122   : > { %2285 = vmatpush2.bf16.msra.mxu0 %v4304_v40  ;;  %v4372_v40 = vld [vmem:[#allocation7 + $0x48c] ss:$16 sps:$4 sm:$0xff]  }
 0x123   : > { %2348 = vmatpush2.bf16.msra.mxu1 %v4307_v53  ;;  %2286 = vmatprep.subr.bf16.mxu0 %v4312_v55  ;;  %v4373_v53 = vld [vmem:[#allocation7 + $0x688] ss:$16 sps:$4 sm:$0xff]   ;;  %v4378_v55 = vld [vmem:[#allocation7 + $0x46c] ss:$16 sps:$4 sm:$0xff]  }
 0x124   : > { %2349 = vmatprep.subr.bf16.mxu1 %v4315_v42  ;;  %v4376_v42 = vld [vmem:[#allocation7 + $0x468] ss:$16 sps:$4 sm:$0xff]  }
 0x126   : > { %2287 = vmatpush2.bf16.msra.mxu0 %v4310_v44  ;;  %v4384_v44 = vld [vmem:[#allocation7 + $0x44c] ss:$16 sps:$4 sm:$0xff]  }
 0x127   : > { %2350 = vmatpush2.bf16.msra.mxu1 %v4313_v45  ;;  %2288 = vmatprep.subr.bf16.mxu0 %v4318_v50  ;;  %v4387_v45 = vld [vmem:[#allocation7 + $0x64c] ss:$16 sps:$4 sm:$0xff]  }
 0x128   : > { %2351 = vmatprep.subr.bf16.mxu1 %v4321_v51  ;;  %v4390_v50 = vld [vmem:[#allocation7 + $0x42c] ss:$16 sps:$4 sm:$0xff]   ;;  %v4391_v51 = vld [vmem:[#allocation7 + $0x628] ss:$16 sps:$4 sm:$0xff]  }
 0x12a   : > { %2289 = vmatpush2.bf16.msra.mxu0 %v4316_v52  ;;  %v4394_v52 = vld [vmem:[#allocation7 + $0x408] ss:$16 sps:$4 sm:$0xff]  }
 0x12b   : > { %2352 = vmatpush2.bf16.msra.mxu1 %v4319_v54  ;;  %2290 = vmatprep.subr.bf16.mxu0 %v4324_v56  ;;  %v4397_v54 = vld [vmem:[#allocation7 + $0x608] ss:$16 sps:$4 sm:$0xff]   ;;  %v4402_v56 = vld [vmem:[#allocation7 + $0x5ec] ss:$16 sps:$4 sm:$0xff]  }
 0x12c   : > { %2353 = vmatprep.subr.bf16.mxu1 %v4327_v57  ;;  %v4405_v57 = vld [vmem:[#allocation7 + $0x7ec] ss:$16 sps:$4 sm:$0xff]  }
 0x12e   : > { %2291 = vmatpush2.bf16.msra.mxu0 %v4322_v59  ;;  %v4408_v59 = vld [vmem:[#allocation7 + $0x5cc] ss:$16 sps:$4 sm:$0xff]  }
 0x12f   : > { %2354 = vmatpush2.bf16.msra.mxu1 %v4325_v60  ;;  %2292 = vmatprep.subr.bf16.mxu0 %v4330_v0  ;;  %v4411_v60 = vld [vmem:[#allocation7 + $0x7cc] ss:$16 sps:$4 sm:$0xff]   ;;  %v4406_v0 = vld [vmem:[#allocation7 + $0x5c8] ss:$16 sps:$4 sm:$0xff]  }
 0x130   : > { %2355 = vmatprep.subr.bf16.mxu1 %v4333_v1  ;;  %v4409_v1 = vld [vmem:[#allocation7 + $0x7c8] ss:$16 sps:$4 sm:$0xff]  }
 0x132   : > { %2293 = vmatpush2.bf16.msra.mxu0 %v4328_v2  ;;  %v4414_v2 = vld [vmem:[#allocation7 + $0x5ac] ss:$16 sps:$4 sm:$0xff]  }
 0x133   : > { %2356 = vmatpush2.bf16.msra.mxu1 %v4331_v3  ;;  %2294 = vmatprep.subr.bf16.mxu0 %v4336_v6  ;;  %v4417_v3 = vld [vmem:[#allocation7 + $0x7ac] ss:$16 sps:$4 sm:$0xff]   ;;  %v4412_v6 = vld [vmem:[#allocation7 + $0x5a8] ss:$16 sps:$4 sm:$0xff]  }
 0x134   : > { %2357 = vmatprep.subr.bf16.mxu1 %v4339_v7  ;;  %v4415_v7 = vld [vmem:[#allocation7 + $0x7a8] ss:$16 sps:$4 sm:$0xff]  }
 0x136   : > { %2295 = vmatpush2.bf16.msra.mxu0 %v4334_v10  ;;  %v4420_v10 = vld [vmem:[#allocation7 + $0x58c] ss:$16 sps:$4 sm:$0xff]  }
 0x137   : > { %2358 = vmatpush2.bf16.msra.mxu1 %v4337_v11  ;;  %2296 = vmatprep.subr.bf16.mxu0 %v4342_v14  ;;  %v4423_v11 = vld [vmem:[#allocation7 + $0x78c] ss:$16 sps:$4 sm:$0xff]   ;;  %v4418_v14 = vld [vmem:[#allocation7 + $0x588] ss:$16 sps:$4 sm:$0xff]  }
 0x138   : > { %2359 = vmatprep.subr.bf16.mxu1 %v4345_v15  ;;  %v4421_v15 = vld [vmem:[#allocation7 + $0x788] ss:$16 sps:$4 sm:$0xff]  }
 0x13a   : > { %2297 = vmatpush2.bf16.msra.mxu0 %v4340_v16  ;;  %v4426_v16 = vld [vmem:[#allocation7 + $0x56c] ss:$16 sps:$4 sm:$0xff]  }
 0x13b   : > { %2360 = vmatpush2.bf16.msra.mxu1 %v4343_v17  ;;  %2298 = vmatprep.subr.bf16.mxu0 %v4348_v19  ;;  %v4429_v17 = vld [vmem:[#allocation7 + $0x76c] ss:$16 sps:$4 sm:$0xff]   ;;  %v4424_v19 = vld [vmem:[#allocation7 + $0x568] ss:$16 sps:$4 sm:$0xff]  }
 0x13c   : > { %2361 = vmatprep.subr.bf16.mxu1 %v4351_v20  ;;  %v4427_v20 = vld [vmem:[#allocation7 + $0x768] ss:$16 sps:$4 sm:$0xff]  }
 0x13e   : > { %2299 = vmatpush2.bf16.msra.mxu0 %v4346_v22  ;;  %v4432_v22 = vld [vmem:[#allocation7 + $0x54c] ss:$16 sps:$4 sm:$0xff]  }
 0x13f   : > { %2362 = vmatpush2.bf16.msra.mxu1 %v4349_v23  ;;  %2394 = vmatprep.subr.bf16.mxu0 %v4354_v25  ;;  %v4435_v23 = vld [vmem:[#allocation7 + $0x74c] ss:$16 sps:$4 sm:$0xff]   ;;  %v4430_v25 = vld [vmem:[#allocation7 + $0x548] ss:$16 sps:$4 sm:$0xff]  }
 0x140   : > { %2457 = vmatprep.subr.bf16.mxu1 %v4357_v26  ;;  %v4433_v26 = vld [vmem:[#allocation7 + $0x748] ss:$16 sps:$4 sm:$0xff]  }
 0x141   : > { %2301 = vmatmul.mubr.bf16.vlgmr.msra.gmra.mxu0 %v5022_v8  ;;  %v4375_v8 = vld [vmem:[#allocation7 + $0x68c] ss:$16 sps:$4 sm:$0xff]  }
 0x142   : > { %2364 = vmatmul.mubr.bf16.vlgmr.msra.gmra.mxu1 %v5024_v9  ;;  %2395 = vmatpush1.bf16.msra.mxu0 %v4352_v27  ;;  %v4370_v9 = vld [vmem:[#allocation7 + $0x488] ss:$16 sps:$4 sm:$0xff]   ;;  %v4438_v27 = vld [vmem:[#allocation7 + $0x52c] ss:$16 sps:$4 sm:$0xff]  }
 0x143   : > { %2458 = vmatpush1.bf16.msra.mxu1 %v4355_v28  ;;  %2396 = vmatprep.subr.bf16.mxu0 %v4360_v32  ;;  %v4441_v28 = vld [vmem:[#allocation7 + $0x72c] ss:$16 sps:$4 sm:$0xff]   ;;  %v4436_v32 = vld [vmem:[#allocation7 + $0x528] ss:$16 sps:$4 sm:$0xff]  }
 0x144   : > { %2459 = vmatprep.subr.bf16.mxu1 %v4363_v33  ;;  %2310 = vmatprep.mubr.bf16.mxu0 %v5030_v24  ;;  %v4381_v24 = vld [vmem:[#allocation7 + $0x66c] ss:$16 sps:$4 sm:$0xff]   ;;  %v4439_v33 = vld [vmem:[#allocation7 + $0x728] ss:$16 sps:$4 sm:$0xff]  }
 0x145   : > { %2373 = vmatprep.mubr.bf16.mxu1 %v5034_v29  ;;  %v4379_v29 = vld [vmem:[#allocation7 + $0x668] ss:$16 sps:$4 sm:$0xff]  }
 0x146   : > { %2397 = vmatpush1.bf16.msra.mxu0 %v4358_v34  ;;  %v4444_v34 = vld [vmem:[#allocation7 + $0x50c] ss:$16 sps:$4 sm:$0xff]  }
 0x147   : > { %2460 = vmatpush1.bf16.msra.mxu1 %v4361_v35  ;;  %2398 = vmatprep.subr.bf16.mxu0 %v4366_v36  ;;  %v4447_v35 = vld [vmem:[#allocation7 + $0x70c] ss:$16 sps:$4 sm:$0xff]   ;;  %v4442_v36 = vld [vmem:[#allocation7 + $0x508] ss:$16 sps:$4 sm:$0xff]  }
 0x148   : > { %2461 = vmatprep.subr.bf16.mxu1 %v4369_v37  ;;  %v4445_v37 = vld [vmem:[#allocation7 + $0x708] ss:$16 sps:$4 sm:$0xff]  }
 0x149   : > { %2311 = vmatmul.mubr.bf16.gmra.mxu0 %v5036_v30  ;;  %v4382_v30 = vld [vmem:[#allocation7 + $0x448] ss:$16 sps:$4 sm:$0xff]  }
 0x14a   : > { %2374 = vmatmul.mubr.bf16.gmra.mxu1 %v5038_v31  ;;  %2399 = vmatpush1.bf16.msra.mxu0 %v4364_v38  ;;  %v4385_v31 = vld [vmem:[#allocation7 + $0x648] ss:$16 sps:$4 sm:$0xff]   ;;  %v4450_v38 = vld [vmem:[#allocation8 + $0x74] ss:$8 sps:$4 sm:$0xff]  }
 0x14b   : > { %2462 = vmatpush1.bf16.msra.mxu1 %v4367_v39  ;;  %2400 = vmatprep.subr.bf16.mxu0 %v4372_v40  ;;  %v4448_v39 = vld [vmem:[#allocation8 + $0x70] ss:$8 sps:$4 sm:$0xff]   ;;  %v4453_v40 = vld [vmem:[#allocation8 + $0x64] ss:$8 sps:$4 sm:$0xff]  }
 0x14c   : > { %2463 = vmatprep.subr.bf16.mxu1 %v4375_v8  ;;  %2320 = vmatprep.mubr.bf16.mxu0 %v5047_v41  ;;  %v4393_v41 = vld [vmem:[#allocation7 + $0x62c] ss:$16 sps:$4 sm:$0xff]   ;;  %v4451_v8 = vld [vmem:[#allocation8 + $0x60] ss:$8 sps:$4 sm:$0xff]  }
 0x14d   : > { %2383 = vmatprep.mubr.bf16.mxu1 %v5050_v43  ;;  %v4388_v43 = vld [vmem:[#allocation7 + $0x428] ss:$16 sps:$4 sm:$0xff]  }
 0x14e   : > { %2401 = vmatpush1.bf16.msra.mxu0 %v4370_v9  ;;  %v4456_v9 = vld [vmem:[#allocation8 + $0x54] ss:$8 sps:$4 sm:$0xff]  }
 0x14f   : > { %2464 = vmatpush1.bf16.msra.mxu1 %v4373_v53  ;;  %2402 = vmatprep.subr.bf16.mxu0 %v4378_v55  ;;  %v4454_v53 = vld [vmem:[#allocation8 + $0x50] ss:$8 sps:$4 sm:$0xff]   ;;  %v4459_v55 = vld [vmem:[#allocation8 + $0x44] ss:$8 sps:$4 sm:$0xff]  }
 0x150   : > { %2465 = vmatprep.subr.bf16.mxu1 %v4381_v24  ;;  %v4496_v24 = vld [vmem:[#allocation8 + $0x170] ss:$8 sps:$4 sm:$0xff]  }
 0x151   : > { %2321 = vmatmul.mubr.bf16.gmra.mxu0 %v5053_v46  ;;  %v4396_v46 = vld [vmem:[#allocation7 + $0x40c] ss:$16 sps:$4 sm:$0xff]  }
 0x152   : > { %2384 = vmatmul.mubr.bf16.gmra.mxu1 %v5055_v47  ;;  %2403 = vmatpush1.bf16.msra.mxu0 %v4376_v42  ;;  %v4399_v47 = vld [vmem:[#allocation7 + $0x60c] ss:$16 sps:$4 sm:$0xff]  }
 0x153   : > { %2466 = vmatpush1.bf16.msra.mxu1 %v4379_v29  ;;  %2404 = vmatprep.subr.bf16.mxu0 %v4384_v44  ;;  %v4498_v42 = vld [vmem:[#allocation8 + $0x174] ss:$8 sps:$4 sm:$0xff]   ;;  %v4460_v44 = vld [vmem:[#allocation8 + $0x30] ss:$8 sps:$4 sm:$0xff]  }
 0x154   : > { %2467 = vmatprep.subr.bf16.mxu1 %v4387_v45  ;;  %2426 = vmatprep.mubr.bf16.mxu0 %v5068_v58  ;;  %v4400_v58 = vld [vmem:[#allocation7 + $0x5e8] ss:$16 sps:$4 sm:$0xff]   ;;  %v4504_v29 = vld [vmem:[#allocation8 + $0x154] ss:$8 sps:$4 sm:$0xff]  }
 0x155   : > { %2489 = vmatprep.mubr.bf16.mxu1 %v5078_v63  ;;  %v4403_v63 = vld [vmem:[#allocation7 + $0x7e8] ss:$16 sps:$4 sm:$0xff]   ;;  %v4468_v45 = vld [vmem:[#allocation8 + $0x14] ss:$8 sps:$4 sm:$0xff]  }
 0x156   : > { %2405 = vmatpush1.bf16.msra.mxu0 %v4382_v30  ;;  %v4505_v30 = vld [vmem:[#allocation8 + $0x140] ss:$8 sps:$4 sm:$0xff]  }
 0x157   : > { %2468 = vmatpush1.bf16.msra.mxu1 %v4385_v31  ;;  %2406 = vmatprep.subr.bf16.mxu0 %v4390_v50 }
 0x158   : > { %2469 = vmatprep.subr.bf16.mxu1 %v4393_v41  ;;  %v4510_v41 = vld [vmem:[#allocation8 + $0x134] ss:$8 sps:$4 sm:$0xff]  }
 0x15a   : > { %2407 = vmatpush1.bf16.msra.mxu0 %v4388_v43  ;;  %v4466_v43 = vld [vmem:[#allocation8 + $0x10] ss:$8 sps:$4 sm:$0xff]  }
 0x15b   : > { %2470 = vmatpush1.bf16.msra.mxu1 %v4391_v51  ;;  %2408 = vmatprep.subr.bf16.mxu0 %v4396_v46 }
 0x15c   : > { %2471 = vmatprep.subr.bf16.mxu1 %v4399_v47  ;;  %v4513_v47 = vld [vmem:[#allocation8 + $0x124] ss:$8 sps:$4 sm:$0xff]  }
 0x15e   : > { %2409 = vmatpush1.bf16.msra.mxu0 %v4394_v52  ;;  %v4469_v52 = vld [vmem:[#allocation8] ss:$8 sps:$4 sm:$0xff]  }
 0x15f   : > { %2472 = vmatpush1.bf16.msra.mxu1 %v4397_v54  ;;  %2410 = vmatprep.subr.bf16.mxu0 %v4402_v56  ;;  %v4474_v54 = vld [vmem:[#allocation8 + $0xf4] ss:$8 sps:$4 sm:$0xff]   ;;  %v4511_v56 = vld [vmem:[#allocation8 + $0x120] ss:$8 sps:$4 sm:$0xff]  }
 0x160   : > { %2473 = vmatprep.subr.bf16.mxu1 %v4405_v57 }
 0x162   : > { %2411 = vmatpush2.bf16.msra.mxu0 %v4400_v58 }
 0x163   : > { %2474 = vmatpush2.bf16.msra.mxu1 %v4403_v63  ;;  %2412 = vmatprep.subr.bf16.mxu0 %v4408_v59  ;;  %v4516_v63 = vld [vmem:[#allocation8 + $0x114] ss:$8 sps:$4 sm:$0xff]   ;;  %v4472_v59 = vld [vmem:[#allocation8 + $0xf0] ss:$8 sps:$4 sm:$0xff]  }
 0x164   : > { %2475 = vmatprep.subr.bf16.mxu1 %v4411_v60  ;;  %v4477_v60 = vld [vmem:[#allocation8 + $0xe4] ss:$8 sps:$4 sm:$0xff]  }
 0x166   : > { %2413 = vmatpush2.bf16.msra.mxu0 %v4406_v0  ;;  %v4514_v0 = vld [vmem:[#allocation8 + $0x110] ss:$8 sps:$4 sm:$0xff]  }
 0x167   : > { %2476 = vmatpush2.bf16.msra.mxu1 %v4409_v1  ;;  %2414 = vmatprep.subr.bf16.mxu0 %v4414_v2 }
 0x168   : > { %2477 = vmatprep.subr.bf16.mxu1 %v4417_v3  ;;  %v4519_v3 = vld [vmem:[#allocation8 + $0x104] ss:$8 sps:$4 sm:$0xff]  }
 0x16a   : > { %2415 = vmatpush2.bf16.msra.mxu0 %v4412_v6 }
 0x16b   : > { %2478 = vmatpush2.bf16.msra.mxu1 %v4415_v7  ;;  %2416 = vmatprep.subr.bf16.mxu0 %v4420_v10  ;;  %v4475_v10 = vld [vmem:[#allocation8 + $0xe0] ss:$8 sps:$4 sm:$0xff]  }
 0x16c   : > { %2479 = vmatprep.subr.bf16.mxu1 %v4423_v11  ;;  %v4480_v11 = vld [vmem:[#allocation8 + $0xd4] ss:$8 sps:$4 sm:$0xff]  }
 0x16e   : > { %2417 = vmatpush2.bf16.msra.mxu0 %v4418_v14  ;;  %v4517_v14 = vld [vmem:[#allocation8 + $0x100] ss:$8 sps:$4 sm:$0xff]  }
 0x16f   : > { %2480 = vmatpush2.bf16.msra.mxu1 %v4421_v15  ;;  %2418 = vmatprep.subr.bf16.mxu0 %v4426_v16  ;;  %v4522_v15 = vld [vmem:[#allocation8 + $0x1f4] ss:$8 sps:$4 sm:$0xff]  }
 0x170   : > { %2481 = vmatprep.subr.bf16.mxu1 %v4429_v17 }
 0x172   : > { %2419 = vmatpush2.bf16.msra.mxu0 %v4424_v19  ;;  %v4478_v19 = vld [vmem:[#allocation8 + $0xd0] ss:$8 sps:$4 sm:$0xff]  }
 0x173   : > { %2482 = vmatpush2.bf16.msra.mxu1 %v4427_v20  ;;  %2420 = vmatprep.subr.bf16.mxu0 %v4432_v22  ;;  %v4483_v20 = vld [vmem:[#allocation8 + $0xc4] ss:$8 sps:$4 sm:$0xff]   ;;  %v4520_v22 = vld [vmem:[#allocation8 + $0x1f0] ss:$8 sps:$4 sm:$0xff]  }
 0x174   : > { %2483 = vmatprep.subr.bf16.mxu1 %v4435_v23  ;;  %v4525_v23 = vld [vmem:[#allocation8 + $0x1e4] ss:$8 sps:$4 sm:$0xff]  }
 0x176   : > { %2421 = vmatpush2.bf16.msra.mxu0 %v4430_v25 }
 0x177   : > { %2484 = vmatpush2.bf16.msra.mxu1 %v4433_v26  ;;  %2422 = vmatprep.subr.bf16.mxu0 %v4438_v27  ;;  %v4481_v27 = vld [vmem:[#allocation8 + $0xc0] ss:$8 sps:$4 sm:$0xff]  }
 0x178   : > { %2485 = vmatprep.subr.bf16.mxu1 %v4441_v28  ;;  %v4486_v28 = vld [vmem:[#allocation8 + $0xb4] ss:$8 sps:$4 sm:$0xff]  }
 0x17a   : > { %2423 = vmatpush2.bf16.msra.mxu0 %v4436_v32  ;;  %v4523_v32 = vld [vmem:[#allocation8 + $0x1e0] ss:$8 sps:$4 sm:$0xff]  }
 0x17b   : > { %2486 = vmatpush2.bf16.msra.mxu1 %v4439_v33  ;;  %2424 = vmatprep.subr.bf16.mxu0 %v4444_v34  ;;  %v4528_v33 = vld [vmem:[#allocation8 + $0x1d4] ss:$8 sps:$4 sm:$0xff]  }
 0x17c   : > { %2487 = vmatprep.subr.bf16.mxu1 %v4447_v35 }
 0x17e   : > { %2425 = vmatpush2.bf16.msra.mxu0 %v4442_v36  ;;  %v4484_v36 = vld [vmem:[#allocation8 + $0xb0] ss:$8 sps:$4 sm:$0xff]  }
 0x17f   : > { %2488 = vmatpush2.bf16.msra.mxu1 %v4445_v37  ;;  %2952 = vmatprep.subr.bf16.mxu0 %v4450_v38  ;;  %v4489_v37 = vld [vmem:[#allocation8 + $0xa4] ss:$8 sps:$4 sm:$0xff]   ;;  %v4526_v38 = vld [vmem:[#allocation8 + $0x1d0] ss:$8 sps:$4 sm:$0xff]  }
 0x180   : > { %3015 = vmatprep.subr.bf16.mxu1 %v4498_v42 }
 0x181   : > { %2427 = vmatmul.mubr.bf16.vlgmr.msra.gmra.mxu0 %v5086_v48  ;;  %v4501_v48 = vld [vmem:[#allocation8 + $0x164] ss:$8 sps:$4 sm:$0xff]   ;;  %v5148_v31 = vpop.f32.mrf.mxu0 }
 0x182   : > { %2490 = vmatmul.mubr.bf16.vlgmr.msra.gmra.mxu1 %v5090_v49  ;;  %2436 = vmatprep.mubr.bf16.mxu0 %v5094_v61  ;;  %v4457_v49 = vld [vmem:[#allocation8 + $0x40] ss:$8 sps:$4 sm:$0xff]   ;;  %v4462_v61 = vld [vmem:[#allocation8 + $0x34] ss:$8 sps:$4 sm:$0xff]   ;;  %v5150_v50 = vpop.f32.mrf.mxu1 }
 0x183   : > { %2499 = vmatprep.mubr.bf16.mxu1 %v5096_v62  ;;  %2953 = vmatpush1.bf16.msra.mxu0 %v4448_v39  ;;  %v4499_v62 = vld [vmem:[#allocation8 + $0x160] ss:$8 sps:$4 sm:$0xff]   ;;  %v5152_v51 = vpop.f32.mrf.mxu0  ;;  %v4531_v39 = vld [vmem:[#allocation8 + $0x1c4] ss:$8 sps:$4 sm:$0xff]  }
 0x184   : > { %2954 = vmatprep.subr.bf16.mxu0 %v4453_v40  ;;  %3016 = vmatpush1.bf16.msra.mxu1 %v4496_v24  ;;  %v5154_v46 = vpop.f32.mrf.mxu1 }
 0x185   : > { %3017 = vmatprep.subr.bf16.mxu1 %v4501_v48  ;;  %v5156_v57 = vpop.f32.mrf.mxu0  ;;  %v4490_v48 = vld [vmem:[#allocation8 + $0x90] ss:$8 sps:$4 sm:$0xff]  }
 0x186   : > { %v5158_v58 = vpop.f32.mrf.mxu1 }
 0x187   : > { %2955 = vmatpush1.bf16.msra.mxu0 %v4451_v8  ;;  %v5160_v1 = vpop.f32.mrf.mxu0 }
 0x188   : > { %2956 = vmatprep.subr.bf16.mxu0 %v4456_v9  ;;  %3018 = vmatpush1.bf16.msra.mxu1 %v4499_v62  ;;  %v5162_v2 = vpop.f32.mrf.mxu1  ;;  %v4487_v9 = vld [vmem:[#allocation8 + $0xa0] ss:$8 sps:$4 sm:$0xff]  }
 0x189   : > { %2437 = vmatmul.mubr.bf16.gmra.mxu0 %v5104_v4  ;;  %v4465_v4 = vld [vmem:[#allocation8 + $0x24] ss:$8 sps:$4 sm:$0xff]   ;;  %3019 = vmatprep.subr.bf16.mxu1 %v4504_v29  ;;  %v5164_v6 = vpop.f32.mrf.mxu0  ;;  %v4493_v29 = vld [vmem:[#allocation8 + $0x80] ss:$8 sps:$4 sm:$0xff]  }
 0x18a   : > { %2500 = vmatmul.mubr.bf16.gmra.mxu1 %v5106_v5  ;;  %2446 = vmatprep.mubr.bf16.mxu0 %v5110_v12  ;;  %v4502_v5 = vld [vmem:[#allocation8 + $0x150] ss:$8 sps:$4 sm:$0xff]   ;;  %v4507_v12 = vld [vmem:[#allocation8 + $0x144] ss:$8 sps:$4 sm:$0xff]   ;;  %v5166_v7 = vpop.f32.mrf.mxu1 }
 0x18b   : > { %2509 = vmatprep.mubr.bf16.mxu1 %v5112_v13  ;;  %2957 = vmatpush1.bf16.msra.mxu0 %v4454_v53  ;;  %v4463_v13 = vld [vmem:[#allocation8 + $0x20] ss:$8 sps:$4 sm:$0xff]   ;;  %v5168_v16 = vpop.f32.mrf.mxu0  ;;  %v4492_v53 = vld [vmem:[#allocation8 + $0x94] ss:$8 sps:$4 sm:$0xff]  }
 0x18c   : > { %2958 = vmatprep.subr.bf16.mxu0 %v4459_v55  ;;  %3020 = vmatpush1.bf16.msra.mxu1 %v4502_v5  ;;  %v5170_v17 = vpop.f32.mrf.mxu1  ;;  %v4529_v55 = vld [vmem:[#allocation8 + $0x1c0] ss:$8 sps:$4 sm:$0xff]   ;;  %v4534_v5 = vld [vmem:[#allocation8 + $0x1b4] ss:$8 sps:$4 sm:$0xff]  }
 0x18d   : > { %3021 = vmatprep.subr.bf16.mxu1 %v4507_v12  ;;  %v5172_v25 = vpop.f32.mrf.mxu0  ;;  %v4532_v12 = vld [vmem:[#allocation8 + $0x1b0] ss:$8 sps:$4 sm:$0xff]  }
 0x18e   : > { %v5174_v26 = vpop.f32.mrf.mxu1 }
 0x18f   : > { %2959 = vmatpush1.bf16.msra.mxu0 %v4457_v49  ;;  %v5176_v34 = vpop.f32.mrf.mxu0  ;;  %v4495_v49 = vld [vmem:[#allocation8 + $0x84] ss:$8 sps:$4 sm:$0xff]  }
 0x190   : > { %2960 = vmatprep.subr.bf16.mxu0 %v4462_v61  ;;  %3022 = vmatpush1.bf16.msra.mxu1 %v4505_v30  ;;  %v5178_v35 = vpop.f32.mrf.mxu1  ;;  %v2116_v30 = vadd.f32 %v5154_v46, %v5152_v51 }
 0x191   : > { %2447 = vmatmul.mubr.bf16.gmra.mxu0 %v5118_v18  ;;  %v4471_v18 = vld [vmem:[#allocation8 + $0x4] ss:$8 sps:$4 sm:$0xff]   ;;  %3023 = vmatprep.subr.bf16.mxu1 %v4510_v41  ;;  %v5180_v40 = vpop.f32.mrf.mxu0  ;;  %v2114_v41 = vadd.f32 %v5150_v50, %v5148_v31  ;;  %v4540_v31 = vld [vmem:[#allocation8 + $0x194] ss:$8 sps:$4 sm:$0xff]  }
 0x192   : > { %2510 = vmatmul.mubr.bf16.gmra.mxu1 %v5120_v21  ;;  %v4508_v21 = vld [vmem:[#allocation8 + $0x130] ss:$8 sps:$4 sm:$0xff]   ;;  %v5182_v8 = vpop.f32.mrf.mxu1 }
 0x193   : > { %2961 = vmatpush1.bf16.msra.mxu0 %v4460_v44  ;;  %v5184_v24 = vpop.f32.mrf.mxu0 }
 0x194   : > { %2962 = vmatprep.subr.bf16.mxu0 %v4465_v4  ;;  %3024 = vmatpush1.bf16.msra.mxu1 %v4508_v21  ;;  %v5186_v42 = vpop.f32.mrf.mxu1  ;;  %v4537_v21 = vld [vmem:[#allocation8 + $0x1a4] ss:$8 sps:$4 sm:$0xff]  }
 0x195   : > { %3025 = vmatprep.subr.bf16.mxu1 %v4513_v47  ;;  %v5188_v61 = vpop.f32.mrf.mxu0  ;;  %v2118_v47 = vadd.f32 %v5158_v58, %v5156_v57  ;;  %v4538_v57 = vld [vmem:[#allocation8 + $0x190] ss:$8 sps:$4 sm:$0xff]  }
 0x196   : > { %v5190_v62 = vpop.f32.mrf.mxu1 }
 0x197   : > { %2963 = vmatpush1.bf16.msra.mxu0 %v4463_v13  ;;  %v5192_v44 = vpop.f32.mrf.mxu0 }
 0x198   : > { %2964 = vmatprep.subr.bf16.mxu0 %v4468_v45  ;;  %3026 = vmatpush1.bf16.msra.mxu1 %v4511_v56  ;;  %v5194_v4 = vpop.f32.mrf.mxu1 }
 0x199   : > { %3027 = vmatprep.subr.bf16.mxu1 %v4516_v63 }
 0x19b   : > { %2965 = vmatpush1.bf16.msra.mxu0 %v4466_v43 }
 0x19c   : > { %2966 = vmatprep.subr.bf16.mxu0 %v4471_v18  ;;  %3028 = vmatpush1.bf16.msra.mxu1 %v4514_v0 }
 0x19d   : > { %3029 = vmatprep.subr.bf16.mxu1 %v4519_v3 }
 0x19f   : > { %2967 = vmatpush1.bf16.msra.mxu0 %v4469_v52 }
 0x1a0   : > { %2968 = vmatprep.subr.bf16.mxu0 %v4474_v54  ;;  %3030 = vmatpush1.bf16.msra.mxu1 %v4517_v14  ;;  %v4535_v54 = vld [vmem:[#allocation8 + $0x1a0] ss:$8 sps:$4 sm:$0xff]  }
 0x1a1   : > { %3031 = vmatprep.subr.bf16.mxu1 %v4522_v15  ;;  %v2126_v15 = vadd.f32 %v5170_v17, %v5168_v16  ;;  %v4541_v16 = vld [vmem:[#allocation8 + $0x180] ss:$8 sps:$4 sm:$0xff]  }
 0x1a3   : > { %2969 = vmatpush2.bf16.msra.mxu0 %v4472_v59 }
 0x1a4   : > { %2970 = vmatprep.subr.bf16.mxu0 %v4477_v60  ;;  %3032 = vmatpush2.bf16.msra.mxu1 %v4520_v22  ;;  %v2120_v60 = vadd.f32 %v5162_v2, %v5160_v1  ;;  %v2124_v2 = vadd.f32 %v5166_v7, %v5164_v6  ;;  %v2130_v6 = vadd.f32 %v5178_v35, %v5176_v34 }
 0x1a5   : > { %3033 = vmatprep.subr.bf16.mxu1 %v4525_v23  ;;  %v4543_v23 = vld [vmem:[#allocation8 + $0x184] ss:$8 sps:$4 sm:$0xff]  }
 0x1a7   : > { %2971 = vmatpush2.bf16.msra.mxu0 %v4475_v10 }
 0x1a8   : > { %2972 = vmatprep.subr.bf16.mxu0 %v4480_v11  ;;  %3034 = vmatpush2.bf16.msra.mxu1 %v4523_v32 }
 0x1a9   : > { %3035 = vmatprep.subr.bf16.mxu1 %v4528_v33 }
 0x1ab   : > { %2973 = vmatpush2.bf16.msra.mxu0 %v4478_v19 }
 0x1ac   : > { %2974 = vmatprep.subr.bf16.mxu0 %v4483_v20  ;;  %3036 = vmatpush2.bf16.msra.mxu1 %v4526_v38 }
 0x1ad   : > { %3037 = vmatprep.subr.bf16.mxu1 %v4531_v39 }
 0x1af   : > { %2975 = vmatpush2.bf16.msra.mxu0 %v4481_v27  ;;  %v2128_v27 = vadd.f32 %v5174_v26, %v5172_v25 }
 0x1b0   : > { %2976 = vmatprep.subr.bf16.mxu0 %v4486_v28  ;;  %3038 = vmatpush2.bf16.msra.mxu1 %v4529_v55 }
 0x1b1   : > { %3039 = vmatprep.subr.bf16.mxu1 %v4534_v5 }
 0x1b3   : > { %2977 = vmatpush2.bf16.msra.mxu0 %v4484_v36 }
 0x1b4   : > { %2978 = vmatprep.subr.bf16.mxu0 %v4489_v37  ;;  %3040 = vmatpush2.bf16.msra.mxu1 %v4532_v12  ;;  %v2134_v12 = vadd.f32 %v5182_v8, %v5180_v40  ;;  %v2140_v40 = vadd.f32 %v5194_v4, %v5192_v44 }
 0x1b5   : > { %3041 = vmatprep.subr.bf16.mxu1 %v4537_v21 }
 0x1b7   : > { %2979 = vmatpush2.bf16.msra.mxu0 %v4487_v9 }
 0x1b8   : > { %2980 = vmatprep.subr.bf16.mxu0 %v4492_v53  ;;  %3042 = vmatpush2.bf16.msra.mxu1 %v4535_v54 }
 0x1b9   : > { %3043 = vmatprep.subr.bf16.mxu1 %v4540_v31 }
 0x1bb   : > { %2981 = vmatpush2.bf16.msra.mxu0 %v4490_v48 }
 0x1bc   : > { %2982 = vmatprep.subr.bf16.mxu0 %v4495_v49  ;;  %3044 = vmatpush2.bf16.msra.mxu1 %v4538_v57 }
 0x1bd   : > { %3045 = vmatprep.subr.bf16.mxu1 %v4543_v23 }
 0x1bf   : > { %2983 = vmatpush2.bf16.msra.mxu0 %v4493_v29  ;;  %v2136_v29 = vadd.f32 %v5186_v42, %v5184_v24 }
 0x1c0   : > { %3046 = vmatpush2.bf16.msra.mxu1 %v4541_v16 }
 0x1c1   : > { %v2176_v13 = vpop.f32.mrf.mxu0 }
 0x1c2   : > { %v2239_v45 = vpop.f32.mrf.mxu1  ;;  %v2177_v56 = vadd.f32 %v2176_v13, %v2114_v41  ;;  %v2138_v41 = vadd.f32 %v5190_v62, %v5188_v61 }
 0x1c3   : > { %v2178_v43 = vpop.f32.mrf.mxu0 }
 0x1c4   : > { %v2241_v18 = vpop.f32.mrf.mxu1  ;;  %v2179_v52 = vadd.f32 %v2178_v43, %v2116_v30  ;;  %v5208_v58 = vadd.f32 %v2239_v45, %v2177_v56 }
 0x1c5   : > { %v2180_v63 = vpop.f32.mrf.mxu0 }
 0x1c6   : > { %v2243_v59 = vpop.f32.mrf.mxu1  ;;  %v2181_v51 = vadd.f32 %v2180_v63, %v2118_v47  ;;  %v5204_v50 = vadd.f32 %v2241_v18, %v2179_v52  ;;  %v5481_v17 = vmax.f32 %v5208_v58, 0.0 }
 0x1c7   : > { %v2182_v46 = vpop.f32.mrf.mxu0 }
 0x1c8   : > { %v2245_v0 = vpop.f32.mrf.mxu1  ;;  %v5206_v3 = vadd.f32 %v2243_v59, %v2181_v51  ;;  %v2183_v10 = vadd.f32 %v2182_v46, %v2120_v60  ;;  %v5482_v28 = vmax.f32 %v5204_v50, 0.0 }
 0x1c9   : > { %v2186_v11 = vpop.f32.mrf.mxu0 }
 0x1ca   : > { %v2249_v14 = vpop.f32.mrf.mxu1  ;;  %v5212_v1 = vadd.f32 %v2245_v0, %v2183_v10  ;;  %v5483_v19 = vmax.f32 %v5206_v3, 0.0  ;;  %v2187_v36 = vadd.f32 %v2186_v11, %v2124_v2 }
 0x1cb   : > { %v2188_v20 = vpop.f32.mrf.mxu0 }
 0x1cc   : > { %v2251_v22 = vpop.f32.mrf.mxu1  ;;  %v5488_v32 = vmax.f32 %v5212_v1, 0.0  ;;  %v2189_v33 = vadd.f32 %v2188_v20, %v2126_v15  ;;  %v2544_v26 = vpack.c.bf16 %v5483_v19, %v5481_v17  ;;  %v5236_v34 = vadd.f32 %v2249_v14, %v2187_v36 }
 0x1cd   : > { %v2190_v37 = vpop.f32.mrf.mxu0 }
 0x1ce   : > { %v2253_v38 = vpop.f32.mrf.mxu1  ;;  %v2545_v7 = vpack.c.bf16 %v5488_v32, %v5482_v28  ;;  %v2191_v25 = vadd.f32 %v2190_v37, %v2128_v27  ;;  %v5232_v53 = vadd.f32 %v2251_v22, %v2189_v33  ;;  %v5490_v47 = vmax.f32 %v5236_v34, 0.0 }
 0x1cf   : > { %v2192_v39 = vpop.f32.mrf.mxu0 }
 0x1d0   : > { %v2255_v9 = vpop.f32.mrf.mxu1  ;;  %v2193_v55 = vadd.f32 %v2192_v39, %v2130_v6  ;;  %v5234_v48 = vadd.f32 %v2253_v38, %v2191_v25  ;;  %2984 = vmatprep.mubr.bf16.mxu0 %v2545_v7  ;;  %v5492_v43 = vmax.f32 %v5232_v53, 0.0 }
 0x1d1   : > { %v2196_v35 = vpop.f32.mrf.mxu0  ;;  %2985 = vmatmul.mubr.bf16.vlgmr.msra.gmra.mxu0 %v2544_v26 }
 0x1d2   : > { %v2259_v49 = vpop.f32.mrf.mxu1  ;;  %v5240_v5 = vadd.f32 %v2255_v9, %v2193_v55  ;;  %v5494_v13 = vmax.f32 %v5234_v48, 0.0  ;;  %v2197_v24 = vadd.f32 %v2196_v35, %v2134_v12 }
 0x1d3   : > { %v2198_v45 = vpop.f32.mrf.mxu0 }
 0x1d4   : > { %v2261_v30 = vpop.f32.mrf.mxu1  ;;  %v5496_v18 = vmax.f32 %v5240_v5, 0.0  ;;  %v2199_v21 = vadd.f32 %v2198_v45, %v2136_v29  ;;  %v2548_v61 = vpack.c.bf16 %v5494_v13, %v5490_v47  ;;  %v5264_v44 = vadd.f32 %v2259_v49, %v2197_v24 }
 0x1d5   : > { %v2200_v42 = vpop.f32.mrf.mxu0 }
 0x1d6   : > { %v2263_v52 = vpop.f32.mrf.mxu1  ;;  %v2549_v8 = vpack.c.bf16 %v5496_v18, %v5492_v43  ;;  %v2201_v54 = vadd.f32 %v2200_v42, %v2138_v41  ;;  %v5260_v63 = vadd.f32 %v2261_v30, %v2199_v21  ;;  %v2536_v31 = vmax.f32 %v5264_v44, 0.0 }
 0x1d7   : > { %v2202_v62 = vpop.f32.mrf.mxu0 }
 0x1d8   : > { %v2265_v56 = vpop.f32.mrf.mxu1  ;;  %v2203_v59 = vadd.f32 %v2202_v62, %v2140_v40  ;;  %v5262_v60 = vadd.f32 %v2263_v52, %v2201_v54  ;;  %2994 = vmatprep.mubr.bf16.mxu0 %v2549_v8  ;;  %v2537_v46 = vmax.f32 %v5260_v63, 0.0  ;;  %v5520_v63 = vmax.f32 %v5240_v5, 0.0 }
 0x1d9   : > { %2995 = vmatmul.mubr.bf16.gmra.mxu0 %v2548_v61 }
 0x1da   : > { %v5266_v4 = vadd.f32 %v2265_v56, %v2203_v59  ;;  %v2540_v51 = vmax.f32 %v5262_v60, 0.0 }
 0x1dc   : > { %v2541_v0 = vmax.f32 %v5266_v4, 0.0  ;;  %v2552_v57 = vpack.c.bf16 %v2540_v51, %v2536_v31 }
 0x1de   : > { %v2553_v10 = vpack.c.bf16 %v2541_v0, %v2537_v46 }
 0x1e0   : > { %3004 = vmatprep.mubr.bf16.mxu0 %v2553_v10 }
 0x1e1   : > { %3005 = vmatmul.mubr.bf16.gmra.mxu0 %v2552_v57 }
 0x201   : > { %v2302_v11 = vpop.f32.mrf.mxu0 }
 0x202   : > { %v2365_v14 = vpop.f32.mrf.mxu1 }
 0x203   : > { %v2304_v15 = vpop.f32.mrf.mxu0  ;;  %v2366_v21 = vadd.f32 %v2365_v14, %v2302_v11 }
 0x204   : > { %v2367_v2 = vpop.f32.mrf.mxu1 }
 0x205   : > { %v2306_v20 = vpop.f32.mrf.mxu0  ;;  %v2368_v41 = vadd.f32 %v2367_v2, %v2304_v15 }
 0x206   : > { %v2369_v22 = vpop.f32.mrf.mxu1 }
 0x207   : > { %v2308_v23 = vpop.f32.mrf.mxu0  ;;  %v2370_v52 = vadd.f32 %v2369_v22, %v2306_v20 }
 0x208   : > { %v2371_v27 = vpop.f32.mrf.mxu1 }
 0x209   : > { %v2312_v33 = vpop.f32.mrf.mxu0  ;;  %v2372_v62 = vadd.f32 %v2371_v27, %v2308_v23 }
 0x20a   : > { %v2375_v16 = vpop.f32.mrf.mxu1 }
 0x20b   : > { %v2314_v36 = vpop.f32.mrf.mxu0  ;;  %v2376_v20 = vadd.f32 %v2375_v16, %v2312_v33 }
 0x20c   : > { %v2377_v37 = vpop.f32.mrf.mxu1 }
 0x20d   : > { %v2316_v38 = vpop.f32.mrf.mxu0  ;;  %v2378_v14 = vadd.f32 %v2377_v37, %v2314_v36 }
 0x20e   : > { %v2379_v6 = vpop.f32.mrf.mxu1 }
 0x20f   : > { %v2318_v7 = vpop.f32.mrf.mxu0  ;;  %v2380_v27 = vadd.f32 %v2379_v6, %v2316_v38 }
 0x210   : > { %v2381_v25 = vpop.f32.mrf.mxu1 }
 0x211   : > { %v2322_v26 = vpop.f32.mrf.mxu0 }
 0x212   : > { %v2385_v39 = vpop.f32.mrf.mxu1 }
 0x213   : > { %v2324_v9 = vpop.f32.mrf.mxu0 }
 0x214   : > { %v2387_v55 = vpop.f32.mrf.mxu1 }
 0x215   : > { %v2326_v35 = vpop.f32.mrf.mxu0 }
 0x216   : > { %v2389_v49 = vpop.f32.mrf.mxu1 }
 0x217   : > { %v5280_v29 = vpop.f32.mrf.mxu0 }
 0x218   : > { %v5282_v12 = vpop.f32.mrf.mxu1 }
 0x241   : > { %v2428_v45 = vpop.f32.mrf.mxu0 }
 0x242   : > { %v2491_v30 = vpop.f32.mrf.mxu1  ;;  %v2429_v8 = vadd.f32 %v2428_v45, %v2366_v21 }
 0x243   : > { %v2430_v24 = vpop.f32.mrf.mxu0 }
 0x244   : > { %v2493_v42 = vpop.f32.mrf.mxu1  ;;  %v2431_v40 = vadd.f32 %v2430_v24, %v2368_v41  ;;  %v5288_v19 = vadd.f32 %v2491_v30, %v2429_v8  ;;  %v2382_v8 = vadd.f32 %v2381_v25, %v2318_v7 }
 0x245   : > { %v2432_v54 = vpop.f32.mrf.mxu0 }
 0x246   : > { %v2495_v61 = vpop.f32.mrf.mxu1  ;;  %v2433_v56 = vadd.f32 %v2432_v54, %v2370_v52  ;;  %v5284_v57 = vadd.f32 %v2493_v42, %v2431_v40  ;;  %v5484_v42 = vmax.f32 %v5288_v19, 0.0 }
 0x247   : > { %v2434_v59 = vpop.f32.mrf.mxu0 }
 0x248   : > { %v2497_v10 = vpop.f32.mrf.mxu1  ;;  %v5286_v17 = vadd.f32 %v2495_v61, %v2433_v56  ;;  %v2435_v28 = vadd.f32 %v2434_v59, %v2372_v62  ;;  %v5485_v41 = vmax.f32 %v5284_v57, 0.0  ;;  %v2388_v62 = vadd.f32 %v2387_v55, %v2324_v9 }
 0x249   : > { %v2438_v15 = vpop.f32.mrf.mxu0  ;;  %v2386_v59 = vadd.f32 %v2385_v39, %v2322_v26  ;;  %v2392_v9 = vadd.f32 %v5282_v12, %v5280_v29 }
 0x24a   : > { %v2501_v11 = vpop.f32.mrf.mxu1  ;;  %v5290_v2 = vadd.f32 %v2497_v10, %v2435_v28  ;;  %v5486_v22 = vmax.f32 %v5286_v17, 0.0  ;;  %v2439_v30 = vadd.f32 %v2438_v15, %v2376_v20  ;;  %v2390_v20 = vadd.f32 %v2389_v49, %v2326_v35 }
 0x24b   : > { %v2440_v45 = vpop.f32.mrf.mxu0 }
 0x24c   : > { %v2503_v23 = vpop.f32.mrf.mxu1  ;;  %v5487_v21 = vmax.f32 %v5290_v2, 0.0  ;;  %v2441_v24 = vadd.f32 %v2440_v45, %v2378_v14  ;;  %v2546_v16 = vpack.c.bf16 %v5486_v22, %v5484_v42  ;;  %v5308_v7 = vadd.f32 %v2501_v11, %v2439_v30 }
 0x24d   : > { %v2442_v52 = vpop.f32.mrf.mxu0 }
 0x24e   : > { %v2505_v40 = vpop.f32.mrf.mxu1  ;;  %v2547_v28 = vpack.c.bf16 %v5487_v21, %v5485_v41  ;;  %v2443_v33 = vadd.f32 %v2442_v52, %v2380_v27  ;;  %v5304_v38 = vadd.f32 %v2503_v23, %v2441_v24  ;;  %v5489_v11 = vmax.f32 %v5308_v7, 0.0 }
 0x24f   : > { %v2444_v36 = vpop.f32.mrf.mxu0 }
 0x250   : > { %v2507_v37 = vpop.f32.mrf.mxu1  ;;  %v5306_v6 = vadd.f32 %v2505_v40, %v2443_v33  ;;  %v2445_v54 = vadd.f32 %v2444_v36, %v2382_v8  ;;  %3047 = vmatprep.mubr.bf16.mxu1 %v2547_v28  ;;  %v5491_v45 = vmax.f32 %v5304_v38, 0.0  ;;  %v5525_v5 = vmax.f32 %v5304_v38, 0.0 }
 0x251   : > { %v2448_v25 = vpop.f32.mrf.mxu0  ;;  %3048 = vmatmul.mubr.bf16.vlgmr.msra.gmra.mxu1 %v2546_v16  ;;  %v5530_v38 = vmax.f32 %v5206_v3, 0.0 }
 0x252   : > { %v2511_v61 = vpop.f32.mrf.mxu1  ;;  %v5310_v56 = vadd.f32 %v2507_v37, %v2445_v54  ;;  %v5493_v10 = vmax.f32 %v5306_v6, 0.0  ;;  %v2449_v24 = vadd.f32 %v2448_v25, %v2386_v59 }
 0x253   : > { %v2450_v15 = vpop.f32.mrf.mxu0 }
 0x254   : > { %v2513_v14 = vpop.f32.mrf.mxu1  ;;  %v5495_v23 = vmax.f32 %v5310_v56, 0.0  ;;  %v2451_v27 = vadd.f32 %v2450_v15, %v2388_v62  ;;  %v2550_v55 = vpack.c.bf16 %v5493_v10, %v5489_v11  ;;  %v5330_v28 = vadd.f32 %v2511_v61, %v2449_v24 }
 0x255   : > { %v2452_v30 = vpop.f32.mrf.mxu0 }
 0x256   : > { %v2515_v52 = vpop.f32.mrf.mxu1  ;;  %v2551_v26 = vpack.c.bf16 %v5495_v23, %v5491_v45  ;;  %v2453_v39 = vadd.f32 %v2452_v30, %v2390_v20  ;;  %v5326_v49 = vadd.f32 %v2513_v14, %v2451_v27  ;;  %v5497_v37 = vmax.f32 %v5330_v28, 0.0 }
 0x257   : > { %v2454_v35 = vpop.f32.mrf.mxu0 }
 0x258   : > { %v5328_v40 = vadd.f32 %v2515_v52, %v2453_v39  ;;  %v2455_v8 = vadd.f32 %v2454_v35, %v2392_v9  ;;  %3057 = vmatprep.mubr.bf16.mxu1 %v2551_v26  ;;  %v2517_v29 = vpop.f32.mrf.mxu1  ;;  %v2539_v16 = vmax.f32 %v5326_v49, 0.0  ;;  %v2622_v39 = vlaneseq }
 0x259   : > { %3058 = vmatmul.mubr.bf16.gmra.mxu1 %v2550_v55  ;;  %v5521_v49 = vmax.f32 %v5310_v56, 0.0  ;;  %v5526_v56 = vmax.f32 %v5236_v34, 0.0  ;;  %v5531_v34 = vmax.f32 %v5286_v17, 0.0 }
 0x25a   : > { %v5332_v12 = vadd.f32 %v2517_v29, %v2455_v8  ;;  %v2542_v33 = vmax.f32 %v5328_v40, 0.0  ;;  %v2623_v55 = vshrl.u32 %v2622_v39, 7  ;;  %v2620_v8 = vld [vmem:[%s5474_s4] sm:$0x3] }
 0x25c   : > { %v2543_v36 = vmax.f32 %v5332_v12, 0.0  ;;  %v2554_v25 = vpack.c.bf16 %v2542_v33, %v5497_v37  ;;  %v2628_v35 = vsub.s32 1, %v2623_v55 }
 0x25e   : > { %v2555_v54 = vpack.c.bf16 %v2543_v36, %v2539_v16  ;;  %v2629_v29 = vrot.slane %v2620_v8, %v2628_v35 }
 0x260   : > { %3067 = vmatprep.mubr.bf16.mxu1 %v2555_v54 }
 0x261   : > { %3068 = vmatmul.mubr.bf16.gmra.mxu1 %v2554_v25 }
 0x291   : > { %v2986_v61 = vpop.f32.mrf.mxu0 }
 0x293   : > { %v2988_v62 = vpop.f32.mrf.mxu0 }
 0x294   : > { %v2989_v25 = vadd.f32 %v2988_v62, %v2629_v29 }
 0x295   : > { %v2990_v59 = vpop.f32.mrf.mxu0 }
 0x297   : > { %v2992_v15 = vpop.f32.mrf.mxu0 }
 0x298   : > { %v2993_v21 = vadd.f32 %v2992_v15, %v2629_v29 }
 0x299   : > { %v2996_v14 = vpop.f32.mrf.mxu0 }
 0x29b   : > { %v2998_v20 = vpop.f32.mrf.mxu0 }
 0x29c   : > { %v2999_v45 = vadd.f32 %v2998_v20, %v2629_v29 }
 0x29d   : > { %v3000_v27 = vpop.f32.mrf.mxu0 }
 0x29f   : > { %v3002_v24 = vpop.f32.mrf.mxu0 }
 0x2a0   : > { %v3003_v35 = vadd.f32 %v3002_v24, %v2629_v29 }
 0x2a1   : > { %v5346_v30 = vpop.f32.mrf.mxu0 }
 0x2a3   : > { %v3008_v52 = vpop.f32.mrf.mxu0 }
 0x2a5   : > { %v3010_v9 = vpop.f32.mrf.mxu0 }
 0x2a6   : > { %v2624_v9 = vsub.s32 0, %v2623_v55 }
 0x2a7   : > { %v3012_v26 = vpop.f32.mrf.mxu0 }
 0x2a8   : > { %v2625_v13 = vrot.slane %v2620_v8, %v2624_v9 }
 0x2aa   : > { %v3007_v9 = vadd.f32 %v5346_v30, %v2625_v13 }
 0x311   : > { %v3049_v54 = vpop.f32.mrf.mxu1 }
 0x313   : > { %v3051_v42 = vpop.f32.mrf.mxu1 }
 0x314   : > { %v3052_v41 = vadd.f32 %v3051_v42, %v2989_v25  ;;  %v2987_v25 = vadd.f32 %v2986_v61, %v2625_v13 }
 0x315   : > { %v3053_v22 = vpop.f32.mrf.mxu1 }
 0x316   : > { %v3940_v32 = vmul.f32 -1.442695, %v3052_v41  ;;  %v3009_v41 = vadd.f32 %v3008_v52, %v2629_v29  ;;  %v3001_v29 = vadd.f32 %v3000_v27, %v2625_v13 }
 0x317   : > { %v3055_v11 = vpop.f32.mrf.mxu1 }
 0x318   : > { %4544 = vpow2.f32 %v3940_v32  ;;  %v3056_v47 = vadd.f32 %v3055_v11, %v2993_v21  ;;  %v3050_v32 = vadd.f32 %v3049_v54, %v2987_v25 }
 0x319   : > { %v3059_v26 = vpop.f32.mrf.mxu1 }
 0x31a   : > { %v3941_v39 = vmul.f32 -1.442695, %v3056_v47  ;;  %v2991_v47 = vadd.f32 %v2990_v59, %v2625_v13 }
 0x31b   : > { %v3061_v43 = vpop.f32.mrf.mxu1 }
 0x31c   : > { %4546 = vpow2.f32 %v3941_v39  ;;  %v3062_v10 = vadd.f32 %v3061_v43, %v2999_v45  ;;  %v3054_v45 = vadd.f32 %v3053_v22, %v2991_v47 }
 0x31d   : > { %v3063_v23 = vpop.f32.mrf.mxu1 }
 0x31e   : > { %v3942_v18 = vmul.f32 -1.442695, %v3062_v10  ;;  %v3064_v54 = vadd.f32 %v3063_v23, %v3001_v29 }
 0x31f   : > { %v3065_v62 = vpop.f32.mrf.mxu1 }
 0x320   : > { %4548 = vpow2.f32 %v3942_v18  ;;  %v3066_v42 = vadd.f32 %v3065_v62, %v3003_v35  ;;  %v2997_v18 = vadd.f32 %v2996_v14, %v2625_v13 }
 0x321   : > { %v3069_v15 = vpop.f32.mrf.mxu1 }
 0x322   : > { %v3943_v37 = vmul.f32 -1.442695, %v3066_v42  ;;  %v3060_v52 = vadd.f32 %v3059_v26, %v2997_v18  ;;  %v3070_v62 = vadd.f32 %v3069_v15, %v3007_v9  ;;  %v3946_v26 = vld [vmem:[%s5475_s5] ss:$0 sm:$0xff] }
 0x323   : > { %v3071_v21 = vpop.f32.mrf.mxu1 }
 0x324   : > { %4550 = vpow2.f32 %v3943_v37  ;;  %v3072_v11 = vadd.f32 %v3071_v21, %v3009_v41 }
 0x325   : > { %v4545_v20 = vpop.eup %4544  ;;  %v3073_v55 = vpop.f32.mrf.mxu1  ;;  %4552 = vtanh.f32 %v3050_v32 }
 0x326   : > { %v3102_v39 = vadd.f32 1.0, %v4545_v20  ;;  %v3944_v43 = vmul.f32 -1.442695, %v3072_v11 }
 0x327   : > { %v3075_v24 = vpop.f32.mrf.mxu1 }
 0x328   : > { %4554 = vrcp.f32 %v3102_v39 }
 0x329   : > { %v4547_v10 = vpop.eup %4546  ;;  %4556 = vpow2.f32 %v3944_v43 }
 0x32a   : > { %v3103_v61 = vadd.f32 1.0, %v4547_v10  ;;  %4558 = vtanh.f32 %v3054_v45 }
 0x32c   : > { %4560 = vrcp.f32 %v3103_v61  ;;  %v4784_v61 = vmov 0.0  }
 0x32d   : > { %v4549_v8 = vpop.eup %4548  ;;  %4562 = vtanh.f32 %v3060_v52  ;;  %3292 = vmatprep.mubr.f32.mxu0 %v4784_v61  ;;  %3363 = vmatprep.mubr.f32.mxu1 %v4784_v61 }
 0x32e   : > { %v3104_v37 = vadd.f32 1.0, %v4549_v8 }
 0x330   : > { %4564 = vrcp.f32 %v3104_v37 }
 0x331   : > { %v4551_v59 = vpop.eup %4550  ;;  %4566 = vtanh.f32 %v3064_v54 }
 0x332   : > { %v3105_v35 = vadd.f32 1.0, %v4551_v59  ;;  %v4553_v22 = vpop.eup %4552 }
 0x334   : > { %4568 = vrcp.f32 %v3105_v35 }
 0x335   : > { %v4555_v14 = vpop.eup %4554  ;;  %4570 = vtanh.f32 %v3070_v62 }
 0x336   : > { %v4557_v42 = vpop.eup %4556  ;;  %v3120_v25 = vmul.f32 %v4555_v14, %v4553_v22 }
 0x337   : > { %v3106_v27 = vadd.f32 1.0, %v4557_v42  ;;  %v4559_v41 = vpop.eup %4558 }
 0x338   : > { %v3133_v23 = vmul.f32 %v3946_v26, %v3120_v25 }
 0x339   : > { %v4561_v32 = vpop.eup %4560  ;;  %4572 = vrcp.f32 %v3106_v27 }
 0x33a   : > { %3139 = vadd.xlane.f32.xlu0 %v3133_v23  ;;  %v3121_v13 = vmul.f32 %v4561_v32, %v4559_v41  ;;  %v4563_v30 = vpop.eup %4562 }
 0x33c   : > { %v3134_v21 = vmul.f32 %v3946_v26, %v3121_v13 }
 0x33d   : > { %v4565_v11 = vpop.eup %4564 }
 0x33e   : > { %3141 = vadd.xlane.f32.xlu0 %v3134_v21  ;;  %v3122_v15 = vmul.f32 %v4565_v11, %v4563_v30  ;;  %v4567_v20 = vpop.eup %4566 }
 0x340   : > { %v3135_v18 = vmul.f32 %v3946_v26, %v3122_v15 }
 0x341   : > { %v4569_v47 = vpop.eup %4568 }
 0x342   : > { %v3123_v55 = vmul.f32 %v4569_v47, %v4567_v20  ;;  %v4571_v43 = vpop.eup %4570 }
 0x344   : > { %v3136_v39 = vmul.f32 %v3946_v26, %v3123_v55 }
 0x346   : > { %v4573_v45 = vpop.eup %4572  ;;  %3145 = vadd.xlane.f32.xlu0 %v3136_v39 }
 0x347   : > { %v3124_v24 = vmul.f32 %v4573_v45, %v4571_v43 }
 0x349   : > { %v3137_v10 = vmul.f32 %v3946_v26, %v3124_v24 }
 0x34b   : > { %3147 = vadd.xlane.f32.xlu1 %v3137_v10 }
 0x34f   : > { %3143 = vadd.xlane.f32.xlu1 %v3135_v18 }
 0x3c3   : > { %v3140_v52 = vpop.xlane.xlu0 %3139 }
 0x3c7   : > { %v3142_v8 = vpop.xlane.xlu0 %3141 }
 0x3c8   : > { %v3171_v54 = vmax.f32 %v3142_v8, -1e+30 }
 0x3cf   : > { %v3146_v59 = vpop.xlane.xlu0 %3145 }
 0x3d4   : > { %v3148_v29 = vpop.xlane.xlu1 %3147 }
 0x3d5   : > { %v3170_v37 = vmax.f32 %v3140_v52, %v3148_v29 }
 0x3d7   : > { %v3172_v35 = vmax.f32 %v3170_v37, %v3171_v54 }
 0x3d8   : > { %v3144_v9 = vpop.xlane.xlu1 %3143 }
 0x3d9   : > { %v3173_v22 = vmax.f32 %v3144_v9, %v3146_v59 }
 0x3db   : > { %v3174_v62 = vmax.f32 %v3172_v35, %v3173_v22 }
 0x3dd   : > { %v3175_v14 = vrot.slane %v3174_v62, 4 }
 0x3df   : > { %v3176_v42 = vmax.f32 %v3174_v62, %v3175_v14 }
 0x3e1   : > { %v3177_v25 = vrot.slane %v3176_v42, 2 }
 0x3e3   : > { %v3178_v26 = vmax.f32 %v3176_v42, %v3177_v25 }
 0x3e5   : > { %v3179_v27 = vrot.slane %v3178_v26, 1 }
 0x3e7   : > { %v3180_v41 = vmax.f32 %v3178_v26, %v3179_v27  ;;  %v5533_v27 = vmax.f32 %v5284_v57, 0.0 }
 0x3e9   : > { %v3185_v23 = vsub.f32 %v3148_v29, %v3180_v41  ;;  %v3186_v32 = vsub.f32 -1e+30, %v3180_v41  ;;  %v3184_v13 = vsub.f32 %v3146_v59, %v3180_v41  ;;  %v3183_v21 = vsub.f32 %v3144_v9, %v3180_v41 }
 0x3ea   : > { %v3182_v15 = vsub.f32 %v3142_v8, %v3180_v41  ;;  %v3181_v47 = vsub.f32 %v3140_v52, %v3180_v41 }
 0x3eb   : > { %v3195_v30 = vmul.f32 1.442695, %v3185_v23  ;;  %v3197_v11 = vmul.f32 1.442695, %v3186_v32  ;;  %v3193_v20 = vmul.f32 1.442695, %v3184_v13 }
 0x3ec   : > { %v3191_v55 = vmul.f32 1.442695, %v3183_v21  ;;  %v3189_v39 = vmul.f32 1.442695, %v3182_v15  ;;  %v3187_v43 = vmul.f32 1.442695, %v3181_v47 }
 0x3ed   : > { %4574 = vpow2.f32 %v3195_v30  ;;  %v5535_v23 = vmax.f32 %v5288_v19, 0.0  ;;  %v3199_v32 = vld [vmem:[%s4998_s19] sm:$0xff] }
 0x3ee   : > { %4576 = vpow2.f32 %v3197_v11 }
 0x3ef   : > { %4578 = vpow2.f32 %v3193_v20 }
 0x3f0   : > { %4580 = vpow2.f32 %v3191_v55 }
 0x3f1   : > { %4582 = vpow2.f32 %v3189_v39 }
 0x3f2   : > { %4584 = vpow2.f32 %v3187_v43 }
 0x3fa   : > { %v5357_v45 = vpop.eup %4574 }
 0x3fb   : > { %v4577_v24 = vpop.eup %4576  ;;  %v3217_v37 = vmul.f32 %v5357_v45, %v2537_v46  ;;  %v3219_v4 = vmul.f32 %v5357_v45, %v2539_v16  ;;  %v3216_v60 = vmul.f32 %v5357_v45, %v2536_v31  ;;  %v5522_v16 = vmax.f32 %v5234_v48, 0.0 }
 0x3fc   : > { %v3221_v10 = vmul.f32 %v4577_v24, %v2541_v0  ;;  %v3223_v18 = vmul.f32 %v4577_v24, %v2543_v36  ;;  %v3220_v52 = vmul.f32 %v4577_v24, %v2540_v51  ;;  %v3222_v8 = vmul.f32 %v4577_v24, %v2542_v33  ;;  %v4579_v29 = vpop.eup %4578 }
 0x3fd   : > { %v4581_v0 = vpop.eup %4580  ;;  %v5519_v51 = vmax.f32 %v5330_v28, 0.0  ;;  %v3213_v46 = vmul.f32 %v4579_v29, %v5520_v63  ;;  %v3215_v12 = vmul.f32 %v4579_v29, %v5521_v49  ;;  %v3212_v44 = vmul.f32 %v4579_v29, %v5522_v16 }
 0x3fe   : > { %3248 = vmatprep.subr.mxu0 %v3221_v10  ;;  %3319 = vmatprep.subr.mxu1 %v3223_v18  ;;  %v4583_v33 = vpop.eup %4582  ;;  %v5523_v31 = vmax.f32 %v5306_v6, 0.0  ;;  %v5524_v28 = vmax.f32 %v5232_v53, 0.0  ;;  %v3211_v59 = vmul.f32 %v4581_v0, %v5525_v5  ;;  %v3208_v35 = vmul.f32 %v4581_v0, %v5526_v56 }
 0x3ff   : > { %3249 = vmatpush1.msra.mxu0 %v3220_v52  ;;  %3320 = vmatpush1.msra.mxu1 %v3222_v8  ;;  %v3218_v40 = vmul.f32 %v5357_v45, %v5519_v51  ;;  %v4585_v9 = vpop.eup %4584  ;;  %v5527_v48 = vmax.f32 %v5308_v7, 0.0  ;;  %v5528_v6 = vmax.f32 %v5212_v1, 0.0  ;;  %v5529_v53 = vmax.f32 %v5290_v2, 0.0 }
 0x400   : > { %3250 = vmatprep.subr.mxu0 %v3217_v37  ;;  %3321 = vmatprep.subr.mxu1 %v3219_v4  ;;  %v3214_v36 = vmul.f32 %v4579_v29, %v5523_v31  ;;  %v3209_v54 = vmul.f32 %v4581_v0, %v5524_v28  ;;  %v3204_v42 = vmul.f32 %v4583_v33, %v5530_v38  ;;  %v5532_v7 = vmax.f32 %v5204_v50, 0.0 }
 0x401   : > { %3251 = vmatpush1.msra.mxu0 %v3216_v60  ;;  %3322 = vmatpush1.msra.mxu1 %v3218_v40  ;;  %v3210_v22 = vmul.f32 %v4581_v0, %v5527_v48  ;;  %v3205_v62 = vmul.f32 %v4583_v33, %v5528_v6  ;;  %v3207_v14 = vmul.f32 %v4583_v33, %v5529_v53  ;;  %v5534_v2 = vmax.f32 %v5208_v58, 0.0 }
 0x402   : > { %3252 = vmatprep.subr.mxu0 %v3213_v46  ;;  %3323 = vmatprep.subr.mxu1 %v3215_v12  ;;  %v3206_v25 = vmul.f32 %v4583_v33, %v5531_v34  ;;  %v3201_v26 = vmul.f32 %v4585_v9, %v5532_v7  ;;  %v3203_v1 = vmul.f32 %v4585_v9, %v5533_v27  ;;  %v4786_v50 = vmov 0  }
 0x403   : > { %3253 = vmatpush1.msra.mxu0 %v3212_v44  ;;  %3324 = vmatpush1.msra.mxu1 %v3214_v36  ;;  %v3200_v41 = vmul.f32 %v4585_v9, %v5534_v2  ;;  %v3202_v3 = vmul.f32 %v4585_v9, %v5535_v23 }
 0x404   : > { %3254 = vmatprep.subr.mxu0 %v3209_v54  ;;  %3325 = vmatprep.subr.mxu1 %v3211_v59 }
 0x405   : > { %3255 = vmatpush1.msra.mxu0 %v3208_v35  ;;  %3326 = vmatpush1.msra.mxu1 %v3210_v22 }
 0x406   : > { %3256 = vmatprep.subr.mxu0 %v3205_v62  ;;  %3327 = vmatprep.subr.mxu1 %v3207_v14 }
 0x407   : > { %3257 = vmatpush1.msra.mxu0 %v3204_v42  ;;  %3328 = vmatpush1.msra.mxu1 %v3206_v25 }
 0x408   : > { %3258 = vmatprep.subr.mxu0 %v3201_v26  ;;  %3329 = vmatprep.subr.mxu1 %v3203_v1 }
 0x409   : > { %3259 = vmatpush1.msra.mxu0 %v3200_v41  ;;  %3330 = vmatpush1.msra.mxu1 %v3202_v3 }
 0x40a   : > { %3963 = vmatprep.subr.mxu0 %v4784_v61  ;;  %3947 = vmatmul.mubr.msk.f32.vlgmr.msra.gmra.mxu0 %vm3224_vm0, %v3199_v32 }
 0x40b   : > { %3964 = vmatpush3.msra.mxu0 %v4577_v24  ;;  %3975 = vmatprep.mubr.msk.f32.mxu0 %vm4785_vm1, %v4784_v61 }
 0x40c   : > { %3965 = vmatprep.subr.mxu0 %v4784_v61  ;;  %3948 = vmatmul.mubr.msk.f32.vlgmr.msra.gmra.mxu1 %vm3224_vm0, %v3199_v32 }
 0x40d   : > { %3966 = vmatpush3.msra.mxu0 %v5357_v45  ;;  %4062 = vset.pattern.permute.xlu1 %v4786_v50 }
 0x40e   : > { %3967 = vmatprep.subr.mxu0 %v4784_v61  ;;  %4063 = vset.pattern.permute.xlu0 %v4786_v50 }
 0x40f   : > { %3968 = vmatpush3.msra.mxu0 %v4579_v29 }
 0x410   : > { %3969 = vmatprep.subr.mxu0 %v4784_v61 }
 0x411   : > { %3970 = vmatpush3.msra.mxu0 %v4581_v0 }
 0x412   : > { %3971 = vmatprep.subr.mxu0 %v4784_v61 }
 0x413   : > { %3972 = vmatpush3.msra.mxu0 %v4583_v33 }
 0x414   : > { %3973 = vmatprep.subr.mxu0 %v4784_v61 }
 0x415   : > { %3974 = vmatpush3.msra.mxu0 %v4585_v9 }
 0x416   : > { %3976 = vmatmul.mubr.msk.f32.vlgmr.msra.gmra.mxu0 %vm3224_vm0, %v3199_v32 }
 0x4ca   : > { %v3294_v58 = vpop.f32.mrf.mxu0 }
 0x4cc   : > { %v3296_v19 = vpop.f32.mrf.mxu0  ;;  %v3365_v21 = vpop.f32.mrf.mxu1 }
 0x4ce   : > { %v3367_v11 = vpop.f32.mrf.mxu1 }
 0x4d6   : > { %v3436_v17 = vpop.f32.mrf.mxu0 }
 0x4d7   : > { %vm3440_vm2 = vcmp.gt.f32.partialorder %v3436_v17, 0.0 }
 0x4d8   : > { %v3441_v57 = vsel %vm3440_vm2, %v3436_v17, 1.0  ;;  %v3977_v13 = vpop.f32.mrf.mxu0 }
 0x4d9   : > { %3444 = vperm.xlu1 %4062, %v3441_v57  }
 0x554   : > { %v3445_v30 = vpop.permute.xlu1 %3444 }
 0x555   : > { %4586 = vrcp.f32 %v3445_v30 }
 0x562   : > { %v4587_v61 = vpop.eup %4586 }
 0x563   : > { %v3450_v15 = vmul.f32 %v4587_v61, %v3365_v21  ;;  %v3451_v20 = vmul.f32 %v4587_v61, %v3367_v11  ;;  %v3448_v47 = vmul.f32 %v4587_v61, %v3294_v58  ;;  %v3449_v55 = vmul.f32 %v4587_v61, %v3296_v19 }
 0x565   : > { %3454 = vst [vmem:[%s335_s2 + $0x10] sm:$0xff] %v3450_v15  ;;  %3455 = vst [vmem:[%s335_s2 + $0x18] sm:$0xff] %v3451_v20 }
 0x566   : > { %3452 = vst [vmem:[%s335_s2] sm:$0xff] %v3448_v47  ;;  %3453 = vst [vmem:[%s335_s2 + $0x8] sm:$0xff] %v3449_v55 }
 0x567   : > { %4709 = shalt.err (!%p4706_p7)
}
 0x568   : > { %s4710_s29 = scalar_lea.hbm %s5428_s15, 512  ;;  %s4714_s19 = scalar_lea.hbm %s5476_s6, 2048 }
 0x569   : > { %p4711_p0 = scmp.ne.s32.totalorder %s5428_s15, %s4710_s29  ;;  %p4715_p10 = scmp.lt.s32.totalorder %s5428_s15, %s5476_s6 }
 0x56a   : > { %p4716_p2 = scmp.lt.s32.totalorder %s4714_s19, %s4710_s29 }
 0x56b   : > { %p4712_p13 = pnand %p4711_p0, %p5536_p5 }
 0x56c   : > { %p4717_p6 = por %p4716_p2, %p4715_p10 }
 0x56d   : > { %p4713_p8 = pneg %p4712_p13 }
 0x56f   : > { %p4718_p11 = pnand %p4717_p6, %p4713_p8 }
 0x571   : > { %4721 = shalt.err (!%p4718_p11)
}
 0x572   : > { %3993 = dma.vmem_to_hbm [thread:$0]  (%p5536_p5), %s5430_s30, 512, %s5428_s15, %s3457_s25  }
 0x573 PF: > { %p4018_p9 = scmp.ge.s32.totalorder %s4772_s24, 2  ;;  %s3483_s8 = sand.u32 1, %s4760_s21  }
 0x574   : > { %p5537_p12 = scmp.ne.s32.totalorder %s5502_s28, 0  ;;  %s3484_s16 = scalar_lea.sflag [#allocation4], %s3483_s8 }
 0x576   : > { %p4010_p3 = pnand %p4018_p9, %p5537_p12 }
 0x578   : > { %p4011_p1 = pneg %p4010_p3 }
 0x57a   : > { %4755 = dma.done.wait (%p4011_p1), %s3484_s16, 512  }
 0x57b   : > { %4757 = vsyncadd (%p4011_p1), %s3484_s16, 4294966784  ;;  %s5538_s18 = sld [smem:[#allocation16_spill]]  ;;  %p23_p4 = scmp.ge.s32.totalorder %s4894_s26, 6  }
 0x57c   : > { %s5539_s21 = smov %s4764_s22  ;;  %s5540_s22 = smov %s4768_s23 }
 0x57d   : > { %s5542_s24 = smov %s4894_s26  ;;  %25 = sbr.rel (!%p23_p4) target bundleno = 12 (0xc), region = 110 }
 0x581   : > { %s5541_s23 = smov %s5538_s18 }
 0x582   :  { %3489 = vsyncpa [#allocation3], 1 }
 0x583   :  { %3491 = vsyncpa [#allocation3 + $0x1], 1 }
 0x584   :  { %3492 = vsyncpa [#allocation6], 1 }
 0x585   :  { %3494 = vsyncpa [#allocation6 + $0x1], 1 }
 0x586   :  { %3495 = vsyncpa [#allocation9], 1 }
 0x587   :  { %3496 = vsyncpa [#allocation4], 1 }
 0x588   :  { %3498 = vsyncpa [#allocation4 + $0x1], 1 }

</bundles_post_ra>
